<compile_context>
chip_gen: v6e
topology: v6e:2x2x1
jax: 0.10.0
libtpu: 0.0.40
codegen_flags: <defaults>
</compile_context>

<pallas_src>
import numpy as np
import jax
import jax.numpy as jnp
from jax.experimental import pallas as pl
from jax.experimental.pallas import tpu as pltpu


# ----------------------------------------------------------------------------
# helpers: two-step full reductions to a (1, 1) scalar tile
# ----------------------------------------------------------------------------
def _rmin(x):
    return jnp.min(jnp.min(x, axis=1, keepdims=True), axis=0, keepdims=True)


def _rmax(x):
    return jnp.max(jnp.max(x, axis=1, keepdims=True), axis=0, keepdims=True)


def _rsum(x):
    return jnp.sum(jnp.sum(x, axis=1, keepdims=True), axis=0, keepdims=True)


# ----------------------------------------------------------------------------
# Kernel 1: compute the crop mask on a sublane-dense (8, W) token layout.
#   data  (24, W) f32:  rows 0..7 = r, rows 8..15 = c, rows 16..23 = valid flag
#         (row-major packing: token t -> (t // W, t % W))
#   params (1, 8) f32:  [u_centroid, u_area, u_aspect,
#                        area_min, area_range, aspect_min, aspect_range, thres]
#   outputs: mask (8, W) f32 {0,1} in the same token order,
#            stats (1, 8) f32 [r0, r1, c0, c1, cen_r, cen_c, n_filt, n_sel]
# ----------------------------------------------------------------------------
def _crop_mask_kernel(params_ref, data_ref, mask_ref, stats_ref):
    p = params_ref[...]
    u0, u1, u2 = p[:, 0:1], p[:, 1:2], p[:, 2:3]
    area_min, area_rng = p[:, 3:4], p[:, 4:5]
    asp_min, asp_rng = p[:, 5:6], p[:, 6:7]
    thres = p[:, 7:8]

    r = data_ref[0:8, :]                               # (8, W)
    c = data_ref[8:16, :]                              # (8, W)
    valid_f = data_ref[16:24, :]                       # (8, W) float {0,1}
    valid_b = valid_f > 0.5

    big = jnp.float32(1e9)
    min_r = _rmin(jnp.where(valid_b, r, big))
    max_r = _rmax(jnp.where(valid_b, r, -big))
    min_c = _rmin(jnp.where(valid_b, c, big))
    max_c = _rmax(jnp.where(valid_b, c, -big))

    # exclude_region_side = sqrt(min_crop_area_thres) // 2
    excl = jnp.floor(jnp.sqrt(thres) / 2.0)
    shrink_r = (max_r - min_r) > (excl * 2.0 + 1.0)
    shrink_c = (max_c - min_c) > (excl * 2.0 + 1.0)
    max_r2 = jnp.where(shrink_r, max_r - excl, max_r)
    min_r2 = jnp.where(shrink_r, min_r + excl, min_r)
    max_c2 = jnp.where(shrink_c, max_c - excl, max_c)
    min_c2 = jnp.where(shrink_c, min_c + excl, min_c)

    # coords_filt = coords[filt_coords(...)]  (strict > / <, as in torch)
    inb = (r > min_r2) & (r < max_r2) & (c > min_c2) & (c < max_c2) & valid_b
    mask_filt_f = inb.astype(jnp.float32)
    cnt_filt = _rsum(mask_filt_f)
    use_all = cnt_filt < 0.5                           # empty-interior fallback
    maskf_f = jnp.where(use_all, valid_f, mask_filt_f)
    cntf = jnp.where(use_all, _rsum(valid_f), cnt_filt)

    # centroid = coords_filt[floor(cnt * u0)]; locate the k-th set bit of
    # maskf (row-major order) with a binary search over masked prefix counts.
    # Counts are small integers held exactly in f32 -> exact comparisons.
    sub, w = r.shape
    flat = (jax.lax.broadcasted_iota(jnp.int32, (sub, w), 0) * w
            + jax.lax.broadcasted_iota(jnp.int32, (sub, w), 1)
            ).astype(jnp.float32)
    k = jnp.floor(cntf * u0)
    k = jnp.maximum(jnp.minimum(k, cntf - 1.0), 0.0)   # guard u0 ~= 1.0
    target = k + 1.0
    npad = sub * w
    lo = jnp.zeros((1, 1), jnp.float32)
    hi = jnp.full((1, 1), float(npad - 1), jnp.float32)
    for _ in range((npad - 1).bit_length()):           # ceil(log2(npad)) steps
        mid = jnp.floor((lo + hi) * 0.5)
        cmid = _rsum(jnp.where(flat <= mid, maskf_f, 0.0))
        go_left = cmid >= target
        hi = jnp.where(go_left, mid, hi)
        lo = jnp.where(go_left, lo, mid + 1.0)
    sel = jnp.where(flat == lo, 1.0, 0.0)              # one-hot at k-th set bit
    centroid_r = _rsum(r * sel)
    centroid_c = _rsum(c * sel)

    # random crop box
    area = jnp.round(u1 * area_rng + area_min)
    aspect = u2 * asp_rng + asp_min
    dr = jnp.sqrt(area / aspect)
    dc = dr * aspect
    dr = jnp.round(dr / 2.0)
    dc = jnp.round(dc / 2.0)
    r0 = centroid_r - dr
    r1 = centroid_r + dr
    c0 = centroid_c - dc
    c1 = centroid_c + dc

    idxs = (r > r0) & (r < r1) & (c > c0) & (c < c1) & valid_b
    idxs_f = idxs.astype(jnp.float32)
    mask_ref[...] = idxs_f

    nsel = _rsum(idxs_f)
    lane8 = jax.lax.broadcasted_iota(jnp.int32, (1, 8), 1)
    zero = jnp.zeros((1, 8), jnp.float32)
    stats = (jnp.where(lane8 == 0, r0, zero) + jnp.where(lane8 == 1, r1, zero)
             + jnp.where(lane8 == 2, c0, zero) + jnp.where(lane8 == 3, c1, zero)
             + jnp.where(lane8 == 4, centroid_r, zero)
             + jnp.where(lane8 == 5, centroid_c, zero)
             + jnp.where(lane8 == 6, cntf, zero)
             + jnp.where(lane8 == 7, nsel, zero))
    stats_ref[...] = stats


def compute_crop_mask(data_24xw, params_1x8):
    w = data_24xw.shape[1]
    return pl.pallas_call(
        _crop_mask_kernel,
        out_shape=(jax.ShapeDtypeStruct((8, w), jnp.float32),
                   jax.ShapeDtypeStruct((1, 8), jnp.float32)),
        in_specs=[pl.BlockSpec(memory_space=pltpu.MemorySpace.VMEM),
                  pl.BlockSpec(memory_space=pltpu.MemorySpace.VMEM)],
        out_specs=(pl.BlockSpec(memory_space=pltpu.MemorySpace.VMEM),
                   pl.BlockSpec(memory_space=pltpu.MemorySpace.VMEM)),
    )(params_1x8, data_24xw)


# ----------------------------------------------------------------------------
# Kernel 2: mask-apply on the NATIVE (N, D) layout, native dtype, per view.
#   mask_col (N, 1) f32 {0,1};  x (N, D);  grid over row tiles.
#   Boolean select (NaN-safe), no transposes, no dtype casts of the data.
# ----------------------------------------------------------------------------
def _apply_mask_kernel(m_ref, x_ref, o_ref):
    keep = m_ref[...] > 0.0                 # (tn, 1) bool, broadcast along D
    x = x_ref[...]
    o_ref[...] = jnp.where(keep, x, jnp.zeros_like(x))


def _choose_row_tile(n, d, itemsize, budget_bytes=8 * 1024 * 1024):
    # double-buffered in + out data blocks (plus the tiny mask column) per step
    # must fit the budget; 8 MiB is safe on v5e (16 MiB scoped), v6e and v7x.
    per_row = 2 * 2 * d * itemsize + 2 * 4
    tn = max(8, (budget_bytes // max(per_row, 1)) // 8 * 8)
    if tn >= n:
        if n >= 16:
            # expose >= 2 parallel grid steps so v7x's 2nd TensorCore gets work
            tn = ((n + 1) // 2 + 7) // 8 * 8
        else:
            tn = n
    return tn


def apply_crop_mask(mask_col, x):
    n, d = x.shape
    tn = _choose_row_tile(n, d, x.dtype.itemsize)
    # TODO(synk): for D < 128 the output stores are lane-masked (vst.msk);
    # acceptable here since such tensors (e.g. coords, D=2) carry little data.
    return pl.pallas_call(
        _apply_mask_kernel,
        out_shape=jax.ShapeDtypeStruct((n, d), x.dtype),
        grid=(pl.cdiv(n, tn),),
        in_specs=[pl.BlockSpec((tn, 1), lambda i: (i, 0)),
                  pl.BlockSpec((tn, d), lambda i: (i, 0))],
        out_specs=pl.BlockSpec((tn, d), lambda i: (i, 0)),
        compiler_params=pltpu.CompilerParams(
            dimension_semantics=("parallel",)),
    )(mask_col, x)


# ----------------------------------------------------------------------------
# Module wrapper (glue: RNG draws, sublane-dense packing of coords only).
# ----------------------------------------------------------------------------
class NViewOneRandomCroppingPallas:
    def __init__(self, masking_size_ranges=(1500, 1700),
                 masking_aspect_ratio_range=(1.0, 1.0),
                 min_crop_area_thres=1600):
        assert min_crop_area_thres >= masking_size_ranges[-1]
        self.masking_area_min_ = float(masking_size_ranges[0])
        self.masking_area_range_ = float(masking_size_ranges[1]
                                         - masking_size_ranges[0])
        self.aspect_min_ = float(masking_aspect_ratio_range[0])
        self.aspect_range_ = float(masking_aspect_ratio_range[1]
                                   - masking_aspect_ratio_range[0])
        self.min_crop_area_thres_ = int(min_crop_area_thres)

    def __call__(self, inst, key):
        embeddings = inst['embeddings']       # list of (N, D), any float dtype
        coords = inst['coords']               # list of (N, 2)
        num_tokens = {int(e.shape[0]) for e in embeddings}
        assert len(num_tokens) == 1
        n = num_tokens.pop()
        if n <= self.min_crop_area_thres_:
            return inst                       # identity path

        # three torch.rand(1) draws -> one jax.random draw
        u = jax.random.uniform(key, (3,), dtype=jnp.float32)
        params = jnp.array(
            [[u[0], u[1], u[2],
              self.masking_area_min_, self.masking_area_range_,
              self.aspect_min_, self.aspect_range_,
              float(self.min_crop_area_thres_)]], dtype=jnp.float32)

        # sublane-dense packing of coords[0]: token t -> (t // W, t % W)
        npad = ((n + 1023) // 1024) * 1024          # 8 sublanes x 128-lane mult
        w = npad // 8
        coords0 = jnp.asarray(coords[0], jnp.float32)           # (N, 2)
        r_pad = jnp.zeros((npad,), jnp.float32).at[:n].set(coords0[:, 0])
        c_pad = jnp.zeros((npad,), jnp.float32).at[:n].set(coords0[:, 1])
        v_pad = jnp.zeros((npad,), jnp.float32).at[:n].set(1.0)
        data = jnp.concatenate([r_pad.reshape(8, w),
                                c_pad.reshape(8, w),
                                v_pad.reshape(8, w)], axis=0)   # (24, W)

        mask8, stats = compute_crop_mask(data, params)          # (8, W), (1, 8)
        mask_flat = mask8.reshape(-1)[:n]                       # (n,)
        mask_col = mask_flat.reshape(n, 1)                      # (n, 1)

        # mask-apply on each view's native layout / native dtype (no transposes)
        emb_m = [apply_crop_mask(mask_col, jnp.asarray(e)) for e in embeddings]
        crd_m = [apply_crop_mask(mask_col, jnp.asarray(c)) for c in coords]

        out = dict(inst)
        out['crop_mask'] = mask_flat
        out['crop_stats'] = stats[0]
        out['embeddings'] = emb_m
        out['coords'] = crd_m
        return out


# ----------------------------------------------------------------------------
# Pure-NumPy float32 reference of the torch forward (same RNG draws).
# ----------------------------------------------------------------------------
def _reference_crop_mask(coords_np, u_np, area_min, area_rng,
                         asp_min, asp_rng, thres):
    f = np.float32
    r = coords_np[:, 0].astype(f)
    c = coords_np[:, 1].astype(f)
    min_r, max_r = r.min(), r.max()
    min_c, max_c = c.min(), c.max()
    excl = f(np.floor(np.sqrt(f(thres)) / f(2.0)))
    if max_r - min_r > excl * f(2.0) + f(1.0):
        max_r = max_r - excl
        min_r = min_r + excl
    if max_c - min_c > excl * f(2.0) + f(1.0):
        max_c = max_c - excl
        min_c = min_c + excl
    filt = (r > min_r) & (r < max_r) & (c > min_c) & (c < max_c)
    idx = np.nonzero(filt)[0]
    if idx.size == 0:
        idx = np.arange(r.shape[0])
    k = int(f(idx.size) * f(u_np[0]))
    cr, cc = r[idx[k]], c[idx[k]]
    area = f(np.round(f(u_np[1]) * f(area_rng) + f(area_min)))
    aspect = f(u_np[2]) * f(asp_rng) + f(asp_min)
    dr = f(np.sqrt(area / aspect))
    dc = dr * aspect
    dr = f(np.round(dr / f(2.0)))
    dc = f(np.round(dc / f(2.0)))
    r0, r1 = cr - dr, cr + dr
    c0, c1 = cc - dc, cc + dc
    return ((r > r0) & (r < r1) & (c > c0) & (c < c1)).astype(np.float32)


if __name__ == "__main__":
    key = jax.random.PRNGKey(0)
    k_coords, k_emb0, k_emb1, k_crop = jax.random.split(key, 4)

    # small but > min_crop_area_thres so the crop path actually runs
    N, D, V = 256, 32, 2
    coords = jax.random.randint(k_coords, (N, 2), 0, 40).astype(jnp.float32)
    emb0 = jax.random.normal(k_emb0, (N, D), jnp.float32).astype(jnp.bfloat16)
    emb1 = jax.random.normal(k_emb1, (N, D), jnp.float32).astype(jnp.bfloat16)

    inst = {
        'path': 'synthetic',
        'embeddings': [emb0, emb1],   # bf16: kernel keeps native dtype
        'coords': [coords, coords],
    }

    crop = NViewOneRandomCroppingPallas(
        masking_size_ranges=(24, 32),
        masking_aspect_ratio_range=(0.75, 1.25),
        min_crop_area_thres=64)

    out = crop(inst, k_crop)
    jax.block_until_ready(out['embeddings'][0])

    mask = out['crop_mask']
    stats = out['crop_stats']
    assert mask.shape == (N,)
    assert bool(jnp.all((mask == 0.0) | (mask == 1.0)))
    assert int(stats[7]) == int(mask.sum())

    # kernel crop mask must match the torch-semantics reference (same RNG draws)
    u_np = np.asarray(jax.random.uniform(k_crop, (3,), dtype=jnp.float32))
    ref_mask = _reference_crop_mask(
        np.asarray(coords), u_np,
        crop.masking_area_min_, crop.masking_area_range_,
        crop.aspect_min_, crop.aspect_range_, float(crop.min_crop_area_thres_))
    assert np.array_equal(np.asarray(mask), ref_mask)

    # native-dtype, native-layout masked apply must equal row-zeroing
    assert out['embeddings'][0].dtype == jnp.bfloat16
    assert out['embeddings'][0].shape == (N, D)
    ref_emb0 = jnp.where(mask[:, None] > 0, emb0, jnp.zeros_like(emb0))
    ref_crd0 = jnp.where(mask[:, None] > 0, coords, jnp.zeros_like(coords))
    assert bool(jnp.array_equal(out['embeddings'][0], ref_emb0))
    assert bool(jnp.array_equal(out['coords'][0], ref_crd0))

    print("KERNEL_OK")
</pallas_src>

<mosaic_0001>
module attributes {stable_mosaic.version = 11 : i64} {
  func.func @_crop_mask_kernel(%arg0: memref<1x8xf32, #tpu.memory_space<vmem>>, %arg1: memref<24x128xf32, #tpu.memory_space<vmem>>, %arg2: memref<8x128xf32, #tpu.memory_space<vmem>>, %arg3: memref<1x8xf32, #tpu.memory_space<vmem>>) attributes {dimension_semantics = [], scalar_prefetch = 0 : i64, scratch_operands = 0 : i64, tpu.core_type = #tpu.core_type<tc>} {
    %c0 = arith.constant 0 : index
    %c0_0 = arith.constant 0 : index
    %0 = vector.load %arg0[%c0, %c0_0] : memref<1x8xf32, #tpu.memory_space<vmem>>, vector<1x8xf32>
    %1 = vector.extract_strided_slice %0 {offsets = [0, 0], sizes = [1, 1], strides = [1, 1]} : vector<1x8xf32> to vector<1x1xf32>
    %2 = vector.extract_strided_slice %0 {offsets = [0, 1], sizes = [1, 1], strides = [1, 1]} : vector<1x8xf32> to vector<1x1xf32>
    %3 = vector.extract_strided_slice %0 {offsets = [0, 2], sizes = [1, 1], strides = [1, 1]} : vector<1x8xf32> to vector<1x1xf32>
    %4 = vector.extract_strided_slice %0 {offsets = [0, 3], sizes = [1, 1], strides = [1, 1]} : vector<1x8xf32> to vector<1x1xf32>
    %5 = vector.extract_strided_slice %0 {offsets = [0, 4], sizes = [1, 1], strides = [1, 1]} : vector<1x8xf32> to vector<1x1xf32>
    %6 = vector.extract_strided_slice %0 {offsets = [0, 5], sizes = [1, 1], strides = [1, 1]} : vector<1x8xf32> to vector<1x1xf32>
    %7 = vector.extract_strided_slice %0 {offsets = [0, 6], sizes = [1, 1], strides = [1, 1]} : vector<1x8xf32> to vector<1x1xf32>
    %8 = vector.extract_strided_slice %0 {offsets = [0, 7], sizes = [1, 1], strides = [1, 1]} : vector<1x8xf32> to vector<1x1xf32>
    %c0_1 = arith.constant 0 : index
    %c0_2 = arith.constant 0 : index
    %9 = vector.load %arg1[%c0_1, %c0_2] : memref<24x128xf32, #tpu.memory_space<vmem>>, vector<8x128xf32>
    %c8 = arith.constant 8 : index
    %c0_3 = arith.constant 0 : index
    %10 = vector.load %arg1[%c8, %c0_3] : memref<24x128xf32, #tpu.memory_space<vmem>>, vector<8x128xf32>
    %c16 = arith.constant 16 : index
    %c0_4 = arith.constant 0 : index
    %11 = vector.load %arg1[%c16, %c0_4] : memref<24x128xf32, #tpu.memory_space<vmem>>, vector<8x128xf32>
    %cst = arith.constant 5.000000e-01 : f32
    %12 = vector.broadcast %cst : f32 to vector<8x128xf32>
    %13 = arith.cmpf ogt, %11, %12 : vector<8x128xf32>
    %cst_5 = arith.constant 1.000000e+09 : f32
    %14 = vector.broadcast %cst_5 : f32 to vector<8x128xf32>
    %15 = arith.select %13, %9, %14 : vector<8x128xi1>, vector<8x128xf32>
    %cst_6 = arith.constant dense<0x7F800000> : vector<8xf32>
    %16 = vector.multi_reduction <minimumf>, %15, %cst_6 [1] : vector<8x128xf32> to vector<8xf32>
    %17 = vector.shape_cast %16 : vector<8xf32> to vector<8x1xf32>
    %cst_7 = arith.constant dense<0x7F800000> : vector<1xf32>
    %18 = vector.multi_reduction <minimumf>, %17, %cst_7 [0] : vector<8x1xf32> to vector<1xf32>
    %19 = vector.shape_cast %18 : vector<1xf32> to vector<1x1xf32>
    %cst_8 = arith.constant 0.000000e+00 : f32
    %cst_9 = arith.constant 1.000000e+09 : f32
    %20 = arith.subf %cst_8, %cst_9 : f32
    %21 = vector.broadcast %20 : f32 to vector<8x128xf32>
    %22 = arith.select %13, %9, %21 : vector<8x128xi1>, vector<8x128xf32>
    %cst_10 = arith.constant dense<0xFF800000> : vector<8xf32>
    %23 = vector.multi_reduction <maximumf>, %22, %cst_10 [1] : vector<8x128xf32> to vector<8xf32>
    %24 = vector.shape_cast %23 : vector<8xf32> to vector<8x1xf32>
    %cst_11 = arith.constant dense<0xFF800000> : vector<1xf32>
    %25 = vector.multi_reduction <maximumf>, %24, %cst_11 [0] : vector<8x1xf32> to vector<1xf32>
    %26 = vector.shape_cast %25 : vector<1xf32> to vector<1x1xf32>
    %cst_12 = arith.constant 1.000000e+09 : f32
    %27 = vector.broadcast %cst_12 : f32 to vector<8x128xf32>
    %28 = arith.select %13, %10, %27 : vector<8x128xi1>, vector<8x128xf32>
    %cst_13 = arith.constant dense<0x7F800000> : vector<8xf32>
    %29 = vector.multi_reduction <minimumf>, %28, %cst_13 [1] : vector<8x128xf32> to vector<8xf32>
    %30 = vector.shape_cast %29 : vector<8xf32> to vector<8x1xf32>
    %cst_14 = arith.constant dense<0x7F800000> : vector<1xf32>
    %31 = vector.multi_reduction <minimumf>, %30, %cst_14 [0] : vector<8x1xf32> to vector<1xf32>
    %32 = vector.shape_cast %31 : vector<1xf32> to vector<1x1xf32>
    %cst_15 = arith.constant 0.000000e+00 : f32
    %cst_16 = arith.constant 1.000000e+09 : f32
    %33 = arith.subf %cst_15, %cst_16 : f32
    %34 = vector.broadcast %33 : f32 to vector<8x128xf32>
    %35 = arith.select %13, %10, %34 : vector<8x128xi1>, vector<8x128xf32>
    %cst_17 = arith.constant dense<0xFF800000> : vector<8xf32>
    %36 = vector.multi_reduction <maximumf>, %35, %cst_17 [1] : vector<8x128xf32> to vector<8xf32>
    %37 = vector.shape_cast %36 : vector<8xf32> to vector<8x1xf32>
    %cst_18 = arith.constant dense<0xFF800000> : vector<1xf32>
    %38 = vector.multi_reduction <maximumf>, %37, %cst_18 [0] : vector<8x1xf32> to vector<1xf32>
    %39 = vector.shape_cast %38 : vector<1xf32> to vector<1x1xf32>
    %40 = math.sqrt %8 : vector<1x1xf32>
    %cst_19 = arith.constant 2.000000e+00 : f32
    %41 = vector.broadcast %cst_19 : f32 to vector<1x1xf32>
    %42 = arith.divf %40, %41 : vector<1x1xf32>
    %43 = math.floor %42 : vector<1x1xf32>
    %44 = arith.subf %26, %19 : vector<1x1xf32>
    %cst_20 = arith.constant 2.000000e+00 : f32
    %45 = vector.broadcast %cst_20 : f32 to vector<1x1xf32>
    %46 = arith.mulf %43, %45 : vector<1x1xf32>
    %cst_21 = arith.constant 1.000000e+00 : f32
    %47 = vector.broadcast %cst_21 : f32 to vector<1x1xf32>
    %48 = arith.addf %46, %47 : vector<1x1xf32>
    %49 = arith.cmpf ogt, %44, %48 : vector<1x1xf32>
    %50 = arith.subf %39, %32 : vector<1x1xf32>
    %cst_22 = arith.constant 2.000000e+00 : f32
    %51 = vector.broadcast %cst_22 : f32 to vector<1x1xf32>
    %52 = arith.mulf %43, %51 : vector<1x1xf32>
    %cst_23 = arith.constant 1.000000e+00 : f32
    %53 = vector.broadcast %cst_23 : f32 to vector<1x1xf32>
    %54 = arith.addf %52, %53 : vector<1x1xf32>
    %55 = arith.cmpf ogt, %50, %54 : vector<1x1xf32>
    %56 = arith.subf %26, %43 : vector<1x1xf32>
    %57 = arith.select %49, %56, %26 : vector<1x1xi1>, vector<1x1xf32>
    %58 = arith.addf %19, %43 : vector<1x1xf32>
    %59 = arith.select %49, %58, %19 : vector<1x1xi1>, vector<1x1xf32>
    %60 = arith.subf %39, %43 : vector<1x1xf32>
    %61 = arith.select %55, %60, %39 : vector<1x1xi1>, vector<1x1xf32>
    %62 = arith.addf %32, %43 : vector<1x1xf32>
    %63 = arith.select %55, %62, %32 : vector<1x1xi1>, vector<1x1xf32>
    %64 = vector.broadcast %59 : vector<1x1xf32> to vector<8x128xf32>
    %65 = arith.cmpf ogt, %9, %64 : vector<8x128xf32>
    %66 = vector.broadcast %57 : vector<1x1xf32> to vector<8x128xf32>
    %67 = arith.cmpf olt, %9, %66 : vector<8x128xf32>
    %68 = arith.andi %65, %67 : vector<8x128xi1>
    %69 = vector.broadcast %63 : vector<1x1xf32> to vector<8x128xf32>
    %70 = arith.cmpf ogt, %10, %69 : vector<8x128xf32>
    %71 = arith.andi %68, %70 : vector<8x128xi1>
    %72 = vector.broadcast %61 : vector<1x1xf32> to vector<8x128xf32>
    %73 = arith.cmpf olt, %10, %72 : vector<8x128xf32>
    %74 = arith.andi %71, %73 : vector<8x128xi1>
    %75 = arith.andi %74, %13 : vector<8x128xi1>
    %76 = arith.extui %75 : vector<8x128xi1> to vector<8x128xi32>
    %77 = arith.sitofp %76 : vector<8x128xi32> to vector<8x128xf32>
    %cst_24 = arith.constant dense<0.000000e+00> : vector<8xf32>
    %78 = vector.multi_reduction <add>, %77, %cst_24 [1] : vector<8x128xf32> to vector<8xf32>
    %79 = vector.shape_cast %78 : vector<8xf32> to vector<8x1xf32>
    %cst_25 = arith.constant dense<0.000000e+00> : vector<1xf32>
    %80 = vector.multi_reduction <add>, %79, %cst_25 [0] : vector<8x1xf32> to vector<1xf32>
    %81 = vector.shape_cast %80 : vector<1xf32> to vector<1x1xf32>
    %cst_26 = arith.constant 5.000000e-01 : f32
    %82 = vector.broadcast %cst_26 : f32 to vector<1x1xf32>
    %83 = arith.cmpf olt, %81, %82 : vector<1x1xf32>
    %84 = vector.shape_cast %83 : vector<1x1xi1> to vector<1x1xi1>
    %85 = vector.broadcast %84 : vector<1x1xi1> to vector<8x128xi1>
    %86 = arith.select %85, %11, %77 : vector<8x128xi1>, vector<8x128xf32>
    %cst_27 = arith.constant dense<0.000000e+00> : vector<8xf32>
    %87 = vector.multi_reduction <add>, %11, %cst_27 [1] : vector<8x128xf32> to vector<8xf32>
    %88 = vector.shape_cast %87 : vector<8xf32> to vector<8x1xf32>
    %cst_28 = arith.constant dense<0.000000e+00> : vector<1xf32>
    %89 = vector.multi_reduction <add>, %88, %cst_28 [0] : vector<8x1xf32> to vector<1xf32>
    %90 = vector.shape_cast %89 : vector<1xf32> to vector<1x1xf32>
    %91 = arith.select %83, %90, %81 : vector<1x1xi1>, vector<1x1xf32>
    %92 = tpu.iota {dimensions = array<i32: 0>} : vector<8x128xi32>
    %c128_i32 = arith.constant 128 : i32
    %93 = vector.broadcast %c128_i32 : i32 to vector<8x128xi32>
    %94 = arith.muli %92, %93 : vector<8x128xi32>
    %95 = tpu.iota {dimensions = array<i32: 1>} : vector<8x128xi32>
    %96 = arith.addi %94, %95 : vector<8x128xi32>
    %97 = arith.sitofp %96 : vector<8x128xi32> to vector<8x128xf32>
    %98 = arith.mulf %91, %1 : vector<1x1xf32>
    %99 = math.floor %98 : vector<1x1xf32>
    %cst_29 = arith.constant 1.000000e+00 : f32
    %100 = vector.broadcast %cst_29 : f32 to vector<1x1xf32>
    %101 = arith.subf %91, %100 : vector<1x1xf32>
    %102 = arith.minimumf %99, %101 : vector<1x1xf32>
    %cst_30 = arith.constant 0.000000e+00 : f32
    %103 = vector.broadcast %cst_30 : f32 to vector<1x1xf32>
    %104 = arith.maximumf %102, %103 : vector<1x1xf32>
    %cst_31 = arith.constant 1.000000e+00 : f32
    %105 = vector.broadcast %cst_31 : f32 to vector<1x1xf32>
    %106 = arith.addf %104, %105 : vector<1x1xf32>
    %cst_32 = arith.constant 0.000000e+00 : f32
    %107 = vector.broadcast %cst_32 : f32 to vector<1x1xf32>
    %cst_33 = arith.constant 1.023000e+03 : f32
    %108 = vector.broadcast %cst_33 : f32 to vector<1x1xf32>
    %109 = arith.addf %107, %108 : vector<1x1xf32>
    %cst_34 = arith.constant 5.000000e-01 : f32
    %110 = vector.broadcast %cst_34 : f32 to vector<1x1xf32>
    %111 = arith.mulf %109, %110 : vector<1x1xf32>
    %112 = math.floor %111 : vector<1x1xf32>
    %113 = vector.broadcast %112 : vector<1x1xf32> to vector<8x128xf32>
    %114 = arith.cmpf ole, %97, %113 : vector<8x128xf32>
    %cst_35 = arith.constant 0.000000e+00 : f32
    %115 = vector.broadcast %cst_35 : f32 to vector<8x128xf32>
    %116 = arith.select %114, %86, %115 : vector<8x128xi1>, vector<8x128xf32>
    %cst_36 = arith.constant dense<0.000000e+00> : vector<8xf32>
    %117 = vector.multi_reduction <add>, %116, %cst_36 [1] : vector<8x128xf32> to vector<8xf32>
    %118 = vector.shape_cast %117 : vector<8xf32> to vector<8x1xf32>
    %cst_37 = arith.constant dense<0.000000e+00> : vector<1xf32>
    %119 = vector.multi_reduction <add>, %118, %cst_37 [0] : vector<8x1xf32> to vector<1xf32>
    %120 = vector.shape_cast %119 : vector<1xf32> to vector<1x1xf32>
    %121 = arith.cmpf oge, %120, %106 : vector<1x1xf32>
    %122 = arith.select %121, %112, %108 : vector<1x1xi1>, vector<1x1xf32>
    %cst_38 = arith.constant 1.000000e+00 : f32
    %123 = vector.broadcast %cst_38 : f32 to vector<1x1xf32>
    %124 = arith.addf %112, %123 : vector<1x1xf32>
    %125 = arith.select %121, %107, %124 : vector<1x1xi1>, vector<1x1xf32>
    %126 = arith.addf %125, %122 : vector<1x1xf32>
    %cst_39 = arith.constant 5.000000e-01 : f32
    %127 = vector.broadcast %cst_39 : f32 to vector<1x1xf32>
    %128 = arith.mulf %126, %127 : vector<1x1xf32>
    %129 = math.floor %128 : vector<1x1xf32>
    %130 = vector.broadcast %129 : vector<1x1xf32> to vector<8x128xf32>
    %131 = arith.cmpf ole, %97, %130 : vector<8x128xf32>
    %cst_40 = arith.constant 0.000000e+00 : f32
    %132 = vector.broadcast %cst_40 : f32 to vector<8x128xf32>
    %133 = arith.select %131, %86, %132 : vector<8x128xi1>, vector<8x128xf32>
    %cst_41 = arith.constant dense<0.000000e+00> : vector<8xf32>
    %134 = vector.multi_reduction <add>, %133, %cst_41 [1] : vector<8x128xf32> to vector<8xf32>
    %135 = vector.shape_cast %134 : vector<8xf32> to vector<8x1xf32>
    %cst_42 = arith.constant dense<0.000000e+00> : vector<1xf32>
    %136 = vector.multi_reduction <add>, %135, %cst_42 [0] : vector<8x1xf32> to vector<1xf32>
    %137 = vector.shape_cast %136 : vector<1xf32> to vector<1x1xf32>
    %138 = arith.cmpf oge, %137, %106 : vector<1x1xf32>
    %139 = arith.select %138, %129, %122 : vector<1x1xi1>, vector<1x1xf32>
    %cst_43 = arith.constant 1.000000e+00 : f32
    %140 = vector.broadcast %cst_43 : f32 to vector<1x1xf32>
    %141 = arith.addf %129, %140 : vector<1x1xf32>
    %142 = arith.select %138, %125, %141 : vector<1x1xi1>, vector<1x1xf32>
    %143 = arith.addf %142, %139 : vector<1x1xf32>
    %cst_44 = arith.constant 5.000000e-01 : f32
    %144 = vector.broadcast %cst_44 : f32 to vector<1x1xf32>
    %145 = arith.mulf %143, %144 : vector<1x1xf32>
    %146 = math.floor %145 : vector<1x1xf32>
    %147 = vector.broadcast %146 : vector<1x1xf32> to vector<8x128xf32>
    %148 = arith.cmpf ole, %97, %147 : vector<8x128xf32>
    %cst_45 = arith.constant 0.000000e+00 : f32
    %149 = vector.broadcast %cst_45 : f32 to vector<8x128xf32>
    %150 = arith.select %148, %86, %149 : vector<8x128xi1>, vector<8x128xf32>
    %cst_46 = arith.constant dense<0.000000e+00> : vector<8xf32>
    %151 = vector.multi_reduction <add>, %150, %cst_46 [1] : vector<8x128xf32> to vector<8xf32>
    %152 = vector.shape_cast %151 : vector<8xf32> to vector<8x1xf32>
    %cst_47 = arith.constant dense<0.000000e+00> : vector<1xf32>
    %153 = vector.multi_reduction <add>, %152, %cst_47 [0] : vector<8x1xf32> to vector<1xf32>
    %154 = vector.shape_cast %153 : vector<1xf32> to vector<1x1xf32>
    %155 = arith.cmpf oge, %154, %106 : vector<1x1xf32>
    %156 = arith.select %155, %146, %139 : vector<1x1xi1>, vector<1x1xf32>
    %cst_48 = arith.constant 1.000000e+00 : f32
    %157 = vector.broadcast %cst_48 : f32 to vector<1x1xf32>
    %158 = arith.addf %146, %157 : vector<1x1xf32>
    %159 = arith.select %155, %142, %158 : vector<1x1xi1>, vector<1x1xf32>
    %160 = arith.addf %159, %156 : vector<1x1xf32>
    %cst_49 = arith.constant 5.000000e-01 : f32
    %161 = vector.broadcast %cst_49 : f32 to vector<1x1xf32>
    %162 = arith.mulf %160, %161 : vector<1x1xf32>
    %163 = math.floor %162 : vector<1x1xf32>
    %164 = vector.broadcast %163 : vector<1x1xf32> to vector<8x128xf32>
    %165 = arith.cmpf ole, %97, %164 : vector<8x128xf32>
    %cst_50 = arith.constant 0.000000e+00 : f32
    %166 = vector.broadcast %cst_50 : f32 to vector<8x128xf32>
    %167 = arith.select %165, %86, %166 : vector<8x128xi1>, vector<8x128xf32>
    %cst_51 = arith.constant dense<0.000000e+00> : vector<8xf32>
    %168 = vector.multi_reduction <add>, %167, %cst_51 [1] : vector<8x128xf32> to vector<8xf32>
    %169 = vector.shape_cast %168 : vector<8xf32> to vector<8x1xf32>
    %cst_52 = arith.constant dense<0.000000e+00> : vector<1xf32>
    %170 = vector.multi_reduction <add>, %169, %cst_52 [0] : vector<8x1xf32> to vector<1xf32>
    %171 = vector.shape_cast %170 : vector<1xf32> to vector<1x1xf32>
    %172 = arith.cmpf oge, %171, %106 : vector<1x1xf32>
    %173 = arith.select %172, %163, %156 : vector<1x1xi1>, vector<1x1xf32>
    %cst_53 = arith.constant 1.000000e+00 : f32
    %174 = vector.broadcast %cst_53 : f32 to vector<1x1xf32>
    %175 = arith.addf %163, %174 : vector<1x1xf32>
    %176 = arith.select %172, %159, %175 : vector<1x1xi1>, vector<1x1xf32>
    %177 = arith.addf %176, %173 : vector<1x1xf32>
    %cst_54 = arith.constant 5.000000e-01 : f32
    %178 = vector.broadcast %cst_54 : f32 to vector<1x1xf32>
    %179 = arith.mulf %177, %178 : vector<1x1xf32>
    %180 = math.floor %179 : vector<1x1xf32>
    %181 = vector.broadcast %180 : vector<1x1xf32> to vector<8x128xf32>
    %182 = arith.cmpf ole, %97, %181 : vector<8x128xf32>
    %cst_55 = arith.constant 0.000000e+00 : f32
    %183 = vector.broadcast %cst_55 : f32 to vector<8x128xf32>
    %184 = arith.select %182, %86, %183 : vector<8x128xi1>, vector<8x128xf32>
    %cst_56 = arith.constant dense<0.000000e+00> : vector<8xf32>
    %185 = vector.multi_reduction <add>, %184, %cst_56 [1] : vector<8x128xf32> to vector<8xf32>
    %186 = vector.shape_cast %185 : vector<8xf32> to vector<8x1xf32>
    %cst_57 = arith.constant dense<0.000000e+00> : vector<1xf32>
    %187 = vector.multi_reduction <add>, %186, %cst_57 [0] : vector<8x1xf32> to vector<1xf32>
    %188 = vector.shape_cast %187 : vector<1xf32> to vector<1x1xf32>
    %189 = arith.cmpf oge, %188, %106 : vector<1x1xf32>
    %190 = arith.select %189, %180, %173 : vector<1x1xi1>, vector<1x1xf32>
    %cst_58 = arith.constant 1.000000e+00 : f32
    %191 = vector.broadcast %cst_58 : f32 to vector<1x1xf32>
    %192 = arith.addf %180, %191 : vector<1x1xf32>
    %193 = arith.select %189, %176, %192 : vector<1x1xi1>, vector<1x1xf32>
    %194 = arith.addf %193, %190 : vector<1x1xf32>
    %cst_59 = arith.constant 5.000000e-01 : f32
    %195 = vector.broadcast %cst_59 : f32 to vector<1x1xf32>
    %196 = arith.mulf %194, %195 : vector<1x1xf32>
    %197 = math.floor %196 : vector<1x1xf32>
    %198 = vector.broadcast %197 : vector<1x1xf32> to vector<8x128xf32>
    %199 = arith.cmpf ole, %97, %198 : vector<8x128xf32>
    %cst_60 = arith.constant 0.000000e+00 : f32
    %200 = vector.broadcast %cst_60 : f32 to vector<8x128xf32>
    %201 = arith.select %199, %86, %200 : vector<8x128xi1>, vector<8x128xf32>
    %cst_61 = arith.constant dense<0.000000e+00> : vector<8xf32>
    %202 = vector.multi_reduction <add>, %201, %cst_61 [1] : vector<8x128xf32> to vector<8xf32>
    %203 = vector.shape_cast %202 : vector<8xf32> to vector<8x1xf32>
    %cst_62 = arith.constant dense<0.000000e+00> : vector<1xf32>
    %204 = vector.multi_reduction <add>, %203, %cst_62 [0] : vector<8x1xf32> to vector<1xf32>
    %205 = vector.shape_cast %204 : vector<1xf32> to vector<1x1xf32>
    %206 = arith.cmpf oge, %205, %106 : vector<1x1xf32>
    %207 = arith.select %206, %197, %190 : vector<1x1xi1>, vector<1x1xf32>
    %cst_63 = arith.constant 1.000000e+00 : f32
    %208 = vector.broadcast %cst_63 : f32 to vector<1x1xf32>
    %209 = arith.addf %197, %208 : vector<1x1xf32>
    %210 = arith.select %206, %193, %209 : vector<1x1xi1>, vector<1x1xf32>
    %211 = arith.addf %210, %207 : vector<1x1xf32>
    %cst_64 = arith.constant 5.000000e-01 : f32
    %212 = vector.broadcast %cst_64 : f32 to vector<1x1xf32>
    %213 = arith.mulf %211, %212 : vector<1x1xf32>
    %214 = math.floor %213 : vector<1x1xf32>
    %215 = vector.broadcast %214 : vector<1x1xf32> to vector<8x128xf32>
    %216 = arith.cmpf ole, %97, %215 : vector<8x128xf32>
    %cst_65 = arith.constant 0.000000e+00 : f32
    %217 = vector.broadcast %cst_65 : f32 to vector<8x128xf32>
    %218 = arith.select %216, %86, %217 : vector<8x128xi1>, vector<8x128xf32>
    %cst_66 = arith.constant dense<0.000000e+00> : vector<8xf32>
    %219 = vector.multi_reduction <add>, %218, %cst_66 [1] : vector<8x128xf32> to vector<8xf32>
    %220 = vector.shape_cast %219 : vector<8xf32> to vector<8x1xf32>
    %cst_67 = arith.constant dense<0.000000e+00> : vector<1xf32>
    %221 = vector.multi_reduction <add>, %220, %cst_67 [0] : vector<8x1xf32> to vector<1xf32>
    %222 = vector.shape_cast %221 : vector<1xf32> to vector<1x1xf32>
    %223 = arith.cmpf oge, %222, %106 : vector<1x1xf32>
    %224 = arith.select %223, %214, %207 : vector<1x1xi1>, vector<1x1xf32>
    %cst_68 = arith.constant 1.000000e+00 : f32
    %225 = vector.broadcast %cst_68 : f32 to vector<1x1xf32>
    %226 = arith.addf %214, %225 : vector<1x1xf32>
    %227 = arith.select %223, %210, %226 : vector<1x1xi1>, vector<1x1xf32>
    %228 = arith.addf %227, %224 : vector<1x1xf32>
    %cst_69 = arith.constant 5.000000e-01 : f32
    %229 = vector.broadcast %cst_69 : f32 to vector<1x1xf32>
    %230 = arith.mulf %228, %229 : vector<1x1xf32>
    %231 = math.floor %230 : vector<1x1xf32>
    %232 = vector.broadcast %231 : vector<1x1xf32> to vector<8x128xf32>
    %233 = arith.cmpf ole, %97, %232 : vector<8x128xf32>
    %cst_70 = arith.constant 0.000000e+00 : f32
    %234 = vector.broadcast %cst_70 : f32 to vector<8x128xf32>
    %235 = arith.select %233, %86, %234 : vector<8x128xi1>, vector<8x128xf32>
    %cst_71 = arith.constant dense<0.000000e+00> : vector<8xf32>
    %236 = vector.multi_reduction <add>, %235, %cst_71 [1] : vector<8x128xf32> to vector<8xf32>
    %237 = vector.shape_cast %236 : vector<8xf32> to vector<8x1xf32>
    %cst_72 = arith.constant dense<0.000000e+00> : vector<1xf32>
    %238 = vector.multi_reduction <add>, %237, %cst_72 [0] : vector<8x1xf32> to vector<1xf32>
    %239 = vector.shape_cast %238 : vector<1xf32> to vector<1x1xf32>
    %240 = arith.cmpf oge, %239, %106 : vector<1x1xf32>
    %241 = arith.select %240, %231, %224 : vector<1x1xi1>, vector<1x1xf32>
    %cst_73 = arith.constant 1.000000e+00 : f32
    %242 = vector.broadcast %cst_73 : f32 to vector<1x1xf32>
    %243 = arith.addf %231, %242 : vector<1x1xf32>
    %244 = arith.select %240, %227, %243 : vector<1x1xi1>, vector<1x1xf32>
    %245 = arith.addf %244, %241 : vector<1x1xf32>
    %cst_74 = arith.constant 5.000000e-01 : f32
    %246 = vector.broadcast %cst_74 : f32 to vector<1x1xf32>
    %247 = arith.mulf %245, %246 : vector<1x1xf32>
    %248 = math.floor %247 : vector<1x1xf32>
    %249 = vector.broadcast %248 : vector<1x1xf32> to vector<8x128xf32>
    %250 = arith.cmpf ole, %97, %249 : vector<8x128xf32>
    %cst_75 = arith.constant 0.000000e+00 : f32
    %251 = vector.broadcast %cst_75 : f32 to vector<8x128xf32>
    %252 = arith.select %250, %86, %251 : vector<8x128xi1>, vector<8x128xf32>
    %cst_76 = arith.constant dense<0.000000e+00> : vector<8xf32>
    %253 = vector.multi_reduction <add>, %252, %cst_76 [1] : vector<8x128xf32> to vector<8xf32>
    %254 = vector.shape_cast %253 : vector<8xf32> to vector<8x1xf32>
    %cst_77 = arith.constant dense<0.000000e+00> : vector<1xf32>
    %255 = vector.multi_reduction <add>, %254, %cst_77 [0] : vector<8x1xf32> to vector<1xf32>
    %256 = vector.shape_cast %255 : vector<1xf32> to vector<1x1xf32>
    %257 = arith.cmpf oge, %256, %106 : vector<1x1xf32>
    %258 = arith.select %257, %248, %241 : vector<1x1xi1>, vector<1x1xf32>
    %cst_78 = arith.constant 1.000000e+00 : f32
    %259 = vector.broadcast %cst_78 : f32 to vector<1x1xf32>
    %260 = arith.addf %248, %259 : vector<1x1xf32>
    %261 = arith.select %257, %244, %260 : vector<1x1xi1>, vector<1x1xf32>
    %262 = arith.addf %261, %258 : vector<1x1xf32>
    %cst_79 = arith.constant 5.000000e-01 : f32
    %263 = vector.broadcast %cst_79 : f32 to vector<1x1xf32>
    %264 = arith.mulf %262, %263 : vector<1x1xf32>
    %265 = math.floor %264 : vector<1x1xf32>
    %266 = vector.broadcast %265 : vector<1x1xf32> to vector<8x128xf32>
    %267 = arith.cmpf ole, %97, %266 : vector<8x128xf32>
    %cst_80 = arith.constant 0.000000e+00 : f32
    %268 = vector.broadcast %cst_80 : f32 to vector<8x128xf32>
    %269 = arith.select %267, %86, %268 : vector<8x128xi1>, vector<8x128xf32>
    %cst_81 = arith.constant dense<0.000000e+00> : vector<8xf32>
    %270 = vector.multi_reduction <add>, %269, %cst_81 [1] : vector<8x128xf32> to vector<8xf32>
    %271 = vector.shape_cast %270 : vector<8xf32> to vector<8x1xf32>
    %cst_82 = arith.constant dense<0.000000e+00> : vector<1xf32>
    %272 = vector.multi_reduction <add>, %271, %cst_82 [0] : vector<8x1xf32> to vector<1xf32>
    %273 = vector.shape_cast %272 : vector<1xf32> to vector<1x1xf32>
    %274 = arith.cmpf oge, %273, %106 : vector<1x1xf32>
    %cst_83 = arith.constant 1.000000e+00 : f32
    %275 = vector.broadcast %cst_83 : f32 to vector<1x1xf32>
    %276 = arith.addf %265, %275 : vector<1x1xf32>
    %277 = arith.select %274, %261, %276 : vector<1x1xi1>, vector<1x1xf32>
    %278 = vector.broadcast %277 : vector<1x1xf32> to vector<8x128xf32>
    %279 = arith.cmpf oeq, %97, %278 : vector<8x128xf32>
    %cst_84 = arith.constant 1.000000e+00 : f32
    %cst_85 = arith.constant 0.000000e+00 : f32
    %280 = vector.broadcast %cst_84 : f32 to vector<8x128xf32>
    %281 = vector.broadcast %cst_85 : f32 to vector<8x128xf32>
    %282 = arith.select %279, %280, %281 : vector<8x128xi1>, vector<8x128xf32>
    %283 = arith.mulf %9, %282 : vector<8x128xf32>
    %cst_86 = arith.constant dense<0.000000e+00> : vector<8xf32>
    %284 = vector.multi_reduction <add>, %283, %cst_86 [1] : vector<8x128xf32> to vector<8xf32>
    %285 = vector.shape_cast %284 : vector<8xf32> to vector<8x1xf32>
    %cst_87 = arith.constant dense<0.000000e+00> : vector<1xf32>
    %286 = vector.multi_reduction <add>, %285, %cst_87 [0] : vector<8x1xf32> to vector<1xf32>
    %287 = vector.shape_cast %286 : vector<1xf32> to vector<1x1xf32>
    %288 = arith.mulf %10, %282 : vector<8x128xf32>
    %cst_88 = arith.constant dense<0.000000e+00> : vector<8xf32>
    %289 = vector.multi_reduction <add>, %288, %cst_88 [1] : vector<8x128xf32> to vector<8xf32>
    %290 = vector.shape_cast %289 : vector<8xf32> to vector<8x1xf32>
    %cst_89 = arith.constant dense<0.000000e+00> : vector<1xf32>
    %291 = vector.multi_reduction <add>, %290, %cst_89 [0] : vector<8x1xf32> to vector<1xf32>
    %292 = vector.shape_cast %291 : vector<1xf32> to vector<1x1xf32>
    %293 = arith.mulf %2, %5 : vector<1x1xf32>
    %294 = arith.addf %293, %4 : vector<1x1xf32>
    %295 = math.roundeven %294 : vector<1x1xf32>
    %296 = arith.mulf %3, %7 : vector<1x1xf32>
    %297 = arith.addf %296, %6 : vector<1x1xf32>
    %298 = arith.divf %295, %297 : vector<1x1xf32>
    %299 = math.sqrt %298 : vector<1x1xf32>
    %300 = arith.mulf %299, %297 : vector<1x1xf32>
    %cst_90 = arith.constant 2.000000e+00 : f32
    %301 = vector.broadcast %cst_90 : f32 to vector<1x1xf32>
    %302 = arith.divf %299, %301 : vector<1x1xf32>
    %303 = math.roundeven %302 : vector<1x1xf32>
    %cst_91 = arith.constant 2.000000e+00 : f32
    %304 = vector.broadcast %cst_91 : f32 to vector<1x1xf32>
    %305 = arith.divf %300, %304 : vector<1x1xf32>
    %306 = math.roundeven %305 : vector<1x1xf32>
    %307 = arith.subf %287, %303 : vector<1x1xf32>
    %308 = arith.addf %287, %303 : vector<1x1xf32>
    %309 = arith.subf %292, %306 : vector<1x1xf32>
    %310 = arith.addf %292, %306 : vector<1x1xf32>
    %311 = vector.broadcast %307 : vector<1x1xf32> to vector<8x128xf32>
    %312 = arith.cmpf ogt, %9, %311 : vector<8x128xf32>
    %313 = vector.broadcast %308 : vector<1x1xf32> to vector<8x128xf32>
    %314 = arith.cmpf olt, %9, %313 : vector<8x128xf32>
    %315 = arith.andi %312, %314 : vector<8x128xi1>
    %316 = vector.broadcast %309 : vector<1x1xf32> to vector<8x128xf32>
    %317 = arith.cmpf ogt, %10, %316 : vector<8x128xf32>
    %318 = arith.andi %315, %317 : vector<8x128xi1>
    %319 = vector.broadcast %310 : vector<1x1xf32> to vector<8x128xf32>
    %320 = arith.cmpf olt, %10, %319 : vector<8x128xf32>
    %321 = arith.andi %318, %320 : vector<8x128xi1>
    %322 = arith.andi %321, %13 : vector<8x128xi1>
    %323 = arith.extui %322 : vector<8x128xi1> to vector<8x128xi32>
    %324 = arith.sitofp %323 : vector<8x128xi32> to vector<8x128xf32>
    %c0_92 = arith.constant 0 : index
    %c0_93 = arith.constant 0 : index
    %325 = vector.load %arg2[%c0_92, %c0_93] : memref<8x128xf32, #tpu.memory_space<vmem>>, vector<8x128xf32>
    tpu.vector_store %arg2[%c0_92, %c0_93], %324 {strides = array<i32>} : memref<8x128xf32, #tpu.memory_space<vmem>>, vector<8x128xf32>,
    %cst_94 = arith.constant dense<0.000000e+00> : vector<8xf32>
    %326 = vector.multi_reduction <add>, %324, %cst_94 [1] : vector<8x128xf32> to vector<8xf32>
    %327 = vector.shape_cast %326 : vector<8xf32> to vector<8x1xf32>
    %cst_95 = arith.constant dense<0.000000e+00> : vector<1xf32>
    %328 = vector.multi_reduction <add>, %327, %cst_95 [0] : vector<8x1xf32> to vector<1xf32>
    %329 = vector.shape_cast %328 : vector<1xf32> to vector<1x1xf32>
    %330 = tpu.iota {dimensions = array<i32: 1>} : vector<1x8xi32>
    %cst_96 = arith.constant 0.000000e+00 : f32
    %331 = vector.broadcast %cst_96 : f32 to vector<1x8xf32>
    %c0_i32 = arith.constant 0 : i32
    %332 = vector.broadcast %c0_i32 : i32 to vector<1x8xi32>
    %333 = arith.cmpi eq, %330, %332 : vector<1x8xi32>
    %334 = vector.shape_cast %307 : vector<1x1xf32> to vector<1x1xf32>
    %335 = vector.broadcast %334 : vector<1x1xf32> to vector<1x8xf32>
    %336 = arith.select %333, %335, %331 : vector<1x8xi1>, vector<1x8xf32>
    %c1_i32 = arith.constant 1 : i32
    %337 = vector.broadcast %c1_i32 : i32 to vector<1x8xi32>
    %338 = arith.cmpi eq, %330, %337 : vector<1x8xi32>
    %339 = vector.shape_cast %308 : vector<1x1xf32> to vector<1x1xf32>
    %340 = vector.broadcast %339 : vector<1x1xf32> to vector<1x8xf32>
    %341 = arith.select %338, %340, %331 : vector<1x8xi1>, vector<1x8xf32>
    %342 = arith.addf %336, %341 : vector<1x8xf32>
    %c2_i32 = arith.constant 2 : i32
    %343 = vector.broadcast %c2_i32 : i32 to vector<1x8xi32>
    %344 = arith.cmpi eq, %330, %343 : vector<1x8xi32>
    %345 = vector.shape_cast %309 : vector<1x1xf32> to vector<1x1xf32>
    %346 = vector.broadcast %345 : vector<1x1xf32> to vector<1x8xf32>
    %347 = arith.select %344, %346, %331 : vector<1x8xi1>, vector<1x8xf32>
    %348 = arith.addf %342, %347 : vector<1x8xf32>
    %c3_i32 = arith.constant 3 : i32
    %349 = vector.broadcast %c3_i32 : i32 to vector<1x8xi32>
    %350 = arith.cmpi eq, %330, %349 : vector<1x8xi32>
    %351 = vector.shape_cast %310 : vector<1x1xf32> to vector<1x1xf32>
    %352 = vector.broadcast %351 : vector<1x1xf32> to vector<1x8xf32>
    %353 = arith.select %350, %352, %331 : vector<1x8xi1>, vector<1x8xf32>
    %354 = arith.addf %348, %353 : vector<1x8xf32>
    %c4_i32 = arith.constant 4 : i32
    %355 = vector.broadcast %c4_i32 : i32 to vector<1x8xi32>
    %356 = arith.cmpi eq, %330, %355 : vector<1x8xi32>
    %357 = vector.shape_cast %287 : vector<1x1xf32> to vector<1x1xf32>
    %358 = vector.broadcast %357 : vector<1x1xf32> to vector<1x8xf32>
    %359 = arith.select %356, %358, %331 : vector<1x8xi1>, vector<1x8xf32>
    %360 = arith.addf %354, %359 : vector<1x8xf32>
    %c5_i32 = arith.constant 5 : i32
    %361 = vector.broadcast %c5_i32 : i32 to vector<1x8xi32>
    %362 = arith.cmpi eq, %330, %361 : vector<1x8xi32>
    %363 = vector.shape_cast %292 : vector<1x1xf32> to vector<1x1xf32>
    %364 = vector.broadcast %363 : vector<1x1xf32> to vector<1x8xf32>
    %365 = arith.select %362, %364, %331 : vector<1x8xi1>, vector<1x8xf32>
    %366 = arith.addf %360, %365 : vector<1x8xf32>
    %c6_i32 = arith.constant 6 : i32
    %367 = vector.broadcast %c6_i32 : i32 to vector<1x8xi32>
    %368 = arith.cmpi eq, %330, %367 : vector<1x8xi32>
    %369 = vector.shape_cast %91 : vector<1x1xf32> to vector<1x1xf32>
    %370 = vector.broadcast %369 : vector<1x1xf32> to vector<1x8xf32>
    %371 = arith.select %368, %370, %331 : vector<1x8xi1>, vector<1x8xf32>
    %372 = arith.addf %366, %371 : vector<1x8xf32>
    %c7_i32 = arith.constant 7 : i32
    %373 = vector.broadcast %c7_i32 : i32 to vector<1x8xi32>
    %374 = arith.cmpi eq, %330, %373 : vector<1x8xi32>
    %375 = vector.shape_cast %329 : vector<1x1xf32> to vector<1x1xf32>
    %376 = vector.broadcast %375 : vector<1x1xf32> to vector<1x8xf32>
    %377 = arith.select %374, %376, %331 : vector<1x8xi1>, vector<1x8xf32>
    %378 = arith.addf %372, %377 : vector<1x8xf32>
    %c0_97 = arith.constant 0 : index
    %c0_98 = arith.constant 0 : index
    %379 = vector.load %arg3[%c0_97, %c0_98] : memref<1x8xf32, #tpu.memory_space<vmem>>, vector<1x8xf32>
    tpu.vector_store %arg3[%c0_97, %c0_98], %378 {strides = array<i32>} : memref<1x8xf32, #tpu.memory_space<vmem>>, vector<1x8xf32>,
    return
  }
}

</mosaic_0001>

<bundles_post_ra>
// kernel: tpu_custom_call.1
= control target key start
LH: loop header
LB: loop body
LE: loop exit
PB: predicated region body
PF: predicated region fallthrough
CT: control target
= control target key end

     0   :  { %9 = vsyncpa [#allocation3], 0  ;;  %s960_s0 = inlined_call_operand.hbm [shape: f32[1,8], index: 0, kind: input, shape index: {}]   ;;  %s961_s1 = inlined_call_operand.hbm [shape: f32[24,128], index: 1, kind: input, shape index: {}]   ;;  %s962_s2 = inlined_call_operand.hbm [shape: f32[8,128], index: 2, kind: output, shape index: {0}]   ;;  %s963_s3 = inlined_call_operand.hbm [shape: f32[1,8], index: 3, kind: output, shape index: {1}]  }
   0x1   :  { %10 = vsyncpa [#allocation6], 0 }
   0x2   :  { %11 = vsyncpa [#allocation4], 0 }
   0x3   :  { %12 = vsyncpa [#allocation9], 0  ;;  %s783_s12 = smov [#allocation2]   ;;  %s784_s14 = smov [#allocation5]  }
   0x4   :  { %s19_s13 = sshll.u32 %s783_s12, 4  ;;  %s28_s15 = sshll.u32 %s784_s14, 4  ;;  %s20_s13 = int_to_ptr.vmem [resolvable:$true] %s19_s13  ;;  %s29_s15 = int_to_ptr.vmem [resolvable:$true] %s28_s15 }
   0x5   :  { %s703_s16 = scalar_lea.vmem %s20_s13, 16  ;;  %s707_s17 = scalar_lea.vmem %s20_s13, 32 }
   0x6   :  { %p704_p0 = scmp.ne.s32.totalorder %s20_s13, %s703_s16  ;;  %p708_p1 = scmp.lt.s32.totalorder %s20_s13, %s20_s13 }
   0x7   :  { %p709_p2 = scmp.lt.s32.totalorder %s707_s17, %s703_s16 }
   0x9   :  { %p710_p3 = por %p709_p2, %p708_p1 }
   0xb   :  { %p711_p4 = pnand %p710_p3, %p704_p0 }
   0xd   :  { %714 = shalt.err (!%p711_p4)
}
   0xe   :  { %22 = dma.hbm_to_vmem [thread:$0]  %s960_s0, 16, %s20_s13, [#allocation3]  }
   0xf   :  { %s723_s20 = scalar_lea.vmem %s29_s15, 384  ;;  %p728_p6 = scmp.lt.s32.totalorder %s29_s15, %s29_s15 }
  0x10   :  { %p724_p5 = scmp.ne.s32.totalorder %s29_s15, %s723_s20  ;;  %p729_p7 = scmp.lt.s32.totalorder %s723_s20, %s723_s20 }
  0x12   :  { %p730_p8 = por %p729_p7, %p728_p6 }
  0x14   :  { %p731_p9 = pnand %p730_p8, %p724_p5 }
  0x16   :  { %734 = shalt.err (!%p731_p9)
}
  0x17   :  { %s785_s21 = smov 128   ;;  %s786_s22 = smov 8  }
  0x18   :  { %34 = dma.hbm_to_vmem [thread:$0]  %s961_s1, 384, %s29_s15, [#allocation6], %s785_s21, %s785_s21, %s786_s22  }
  0x19   :  { %775 = dma.done.wait [#allocation3], 16  }
  0x1a   :  { %776 = vsyncadd [#allocation3], 4294967280 }
  0x1b   :  { %777 = dma.done.wait [#allocation6], 384  }
  0x1c   :  { %778 = vsyncadd [#allocation6], 4294966912  ;;  %v825_v0 = vld [vmem:[#allocation5 + $0x8] sm:$0xff]  ;;  %v827_v1 = vld [vmem:[#allocation5 + $0x10] sm:$0xff]  ;;  %v787_v7 = vmov 7   ;;  %v107_v34 = vlaneseq  ;;  %s792_s0 = smov 124  }
  0x1d   :  { %v829_v2 = vld [vmem:[#allocation5] sm:$0xff]  ;;  %vm45_vm0 = vcmp.gt.f32.partialorder %v827_v1, 0.5  ;;  %684 = vset.pattern.permute.xlu1 %v787_v7  ;;  %683 = vset.pattern.permute.xlu0 %v787_v7  ;;  %v844_v8 = vld [vmem:[#allocation2] sm:$0x1]  ;;  %s793_s1 = smov 125   ;;  %s794_s25 = smov 127  }
  0x1e   :  { %v64_v3 = vsel %vm45_vm0, %v825_v0, 1e+09  ;;  %v46_v4 = vsel %vm45_vm0, %v829_v2, 1e+09  ;;  %v73_v5 = vsel %vm45_vm0, %v825_v0, -1e+09  ;;  %689 = vrsqrt.f32 %v844_v8 }
  0x1f   :  { %65 = vmin.xlane.f32.xlu1 %v64_v3  ;;  %47 = vmin.xlane.f32.xlu0 %v46_v4  ;;  %v55_v6 = vsel %vm45_vm0, %v829_v2, -1e+09  ;;  %vm84_vm1 = vcmp.eq.f32.partialorder %v844_v8, inf  ;;  %v87_v11 = vand.u32 2147483648, %v844_v8  ;;  %vm86_vm2 = vcmp.eq.f32.partialorder %v844_v8, 0.0  ;;  %s795_s26 = smov 126  }
  0x20   :  { %v108_v42 = vshrl.u32 %v107_v34, 7  ;;  %s797_s27 = smov [#allocation7]  }
  0x21   :  { %s616_s28 = sshll.u32 %s797_s27, 4  ;;  %s617_s28 = int_to_ptr.vmem [resolvable:$true] %s616_s28 }
  0x22   :  { %v852_v49 = vsub.s32 0, %v108_v42  ;;  %s735_s29 = scalar_lea.vmem %s617_s28, 128  ;;  %p740_p11 = scmp.lt.s32.totalorder %s617_s28, %s617_s28 }
  0x23   :  { %74 = vmax.xlane.f32.xlu1 %v73_v5  ;;  %56 = vmax.xlane.f32.xlu0 %v55_v6  ;;  %v788_v6 = vmov 0.0   ;;  %p736_p10 = scmp.ne.s32.totalorder %s617_s28, %s735_s29  ;;  %p741_p12 = scmp.lt.s32.totalorder %s735_s29, %s735_s29 }
  0x25   :  { %p742_p13 = por %p741_p12, %p740_p11 }
  0x27   :  { %p743_p0 = pnand %p742_p13, %p736_p10 }
  0x2b   :  { %v690_v9 = vpop.eup %689 }
  0x2c   :  { %v83_v10 = vmul.f32 %v690_v9, %v844_v8 }
  0x2e   :  { %v85_v12 = vsel %vm84_vm1, %v844_v8, %v83_v10 }
  0x2f   :  { %v88_v17 = vsel %vm86_vm2, %v87_v11, %v85_v12 }
  0x30   :  { %v90_v22 = vmul.f32 0.5, %v88_v17 }
  0x32   :  { %v91_v33 = vfloor.f32 %v90_v22 }
  0x34   :  { %v93_v39 = vmul.f32 2.0, %v91_v33 }
  0x36   :  { %v94_v47 = vadd.f32 1.0, %v93_v39 }
  0xa8   :  { %v66_v13 = vpop.xlane.xlu1 %65  ;;  %v48_v14 = vpop.xlane.xlu0 %47 }
  0xa9   :  { %v67_v15 = vrot.slane %v66_v13, 4  ;;  %v49_v16 = vrot.slane %v48_v14, 4 }
  0xab   :  { %v68_v18 = vmin.f32 %v66_v13, %v67_v15  ;;  %v50_v19 = vmin.f32 %v48_v14, %v49_v16  ;;  %v175_v14 = vmul.u32 128, %v108_v42  ;;  %v866_v15 = vand.u32 127, %v107_v34 }
  0xac   :  { %v75_v20 = vpop.xlane.xlu1 %74  ;;  %v57_v21 = vpop.xlane.xlu0 %56 }
  0xad   :  { %v69_v23 = vrot.slane %v68_v18, 2  ;;  %v51_v24 = vrot.slane %v50_v19, 2  ;;  %v76_v25 = vrot.slane %v75_v20, 4  ;;  %v58_v26 = vrot.slane %v57_v21, 4 }
  0xaf   :  { %v70_v27 = vmin.f32 %v68_v18, %v69_v23  ;;  %v52_v28 = vmin.f32 %v50_v19, %v51_v24  ;;  %v77_v29 = vmax.f32 %v75_v20, %v76_v25  ;;  %v59_v30 = vmax.f32 %v57_v21, %v58_v26 }
  0xb0   :  { %v178_v19 = vadd.s32 %v866_v15, %v175_v14 }
  0xb1   :  { %v78_v31 = vrot.slane %v77_v29, 2  ;;  %v60_v32 = vrot.slane %v59_v30, 2  ;;  %v53_v35 = vrot.slane %v52_v28, 1  ;;  %v71_v36 = vrot.slane %v70_v27, 1 }
  0xb2   :  { %v869_v23 = vcvt.s32.f32 %v178_v19 }
  0xb3   :  { %v79_v37 = vmax.f32 %v77_v29, %v78_v31  ;;  %v61_v38 = vmax.f32 %v59_v30, %v60_v32  ;;  %v54_v43 = vmin.f32 %v52_v28, %v53_v35  ;;  %v72_v44 = vmin.f32 %v70_v27, %v71_v36 }
  0xb4   :  { %vm186_vm13 = vcmp.le.f32.partialorder %v869_v23, 511.0  ;;  %v789_v30 = vmov 0  }
  0xb5   :  { %v80_v40 = vrot.slane %v79_v37, 1  ;;  %v62_v41 = vrot.slane %v61_v38, 1  ;;  %v100_v52 = vadd.f32 %v91_v33, %v54_v43  ;;  %v104_v55 = vadd.f32 %v91_v33, %v72_v44 }
  0xb7   :  { %v81_v45 = vmax.f32 %v79_v37, %v80_v40  ;;  %v63_v46 = vmax.f32 %v61_v38, %v62_v41 }
  0xb9   :  { %v92_v48 = vsub.f32 %v63_v46, %v54_v43  ;;  %v98_v50 = vsub.f32 %v63_v46, %v91_v33  ;;  %v96_v51 = vsub.f32 %v81_v45, %v72_v44  ;;  %v102_v59 = vsub.f32 %v81_v45, %v91_v33 }
  0xbb   :  { %vm95_vm3 = vcmp.gt.f32.partialorder %v92_v48, %v94_v47  ;;  %vm97_vm4 = vcmp.gt.f32.partialorder %v96_v51, %v94_v47 }
  0xbc   :  { %v101_v53 = vsel %vm95_vm3, %v100_v52, %v54_v43  ;;  %v99_v54 = vsel %vm95_vm3, %v98_v50, %v63_v46  ;;  %v105_v58 = vsel %vm97_vm4, %v104_v55, %v72_v44  ;;  %v103_v61 = vsel %vm97_vm4, %v102_v59, %v81_v45 }
  0xbd   :  { %v110_v56 = vrot.slane %v101_v53, %v852_v49  ;;  %v120_v57 = vrot.slane %v99_v54, %v852_v49  ;;  %v131_v60 = vrot.slane %v105_v58, %v852_v49  ;;  %v142_v62 = vrot.slane %v103_v61, %v852_v49 }
  0xbe   :  { %v790_v44 = vmov 1023.0   ;;  %v791_v46 = vmov 512.0  }
  0xbf   :  { %112 = vperm.xlu0 %683, %v110_v56   ;;  %122 = vperm.xlu1 %684, %v120_v57  }
  0xc3   :  { %133 = vperm.xlu1 %684, %v131_v60   ;;  %686 = vset.pattern.permute.xlu0 %v789_v30 }
  0xc7   :  { %144 = vperm.xlu1 %684, %v142_v62  }
  0xcb   :  { %685 = vset.pattern.permute.xlu1 %v789_v30 }
  0xde   :  { %164 = vadd.xlane.f32.xlu0 %v827_v1 }
 0x13a   :  { %v123_v63 = vpop.permute.xlu1 %122  ;;  %v113_v3 = vpop.permute.xlu0 %112 }
 0x13b   :  { %vm115_vm5 = vcmp.gt.f32.partialorder %v829_v2, %v113_v3  ;;  %vm125_vm6 = vcmp.lt.f32.partialorder %v829_v2, %v123_v63 }
 0x13c   :  { %vm126_vm8 = vmand %vm115_vm5, %vm125_vm6 }
 0x13e   :  { %v134_v4 = vpop.permute.xlu1 %133 }
 0x13f   :  { %vm136_vm7 = vcmp.gt.f32.partialorder %v825_v0, %v134_v4 }
 0x140   :  { %vm137_vm9 = vmand %vm126_vm8, %vm136_vm7 }
 0x142   :  { %v145_v5 = vpop.permute.xlu1 %144 }
 0x143   :  { %vm147_vm10 = vcmp.lt.f32.partialorder %v825_v0, %v145_v5 }
 0x144   :  { %vm148_vm11 = vmand %vm137_vm9, %vm147_vm10 }
 0x145   :  { %vm149_vm12 = vmand %vm148_vm11, %vm45_vm0 }
 0x146   :  { %v640_v7 = vsel %vm149_vm12, 1.0, %v788_v6 }
 0x147   :  { %152 = vadd.xlane.f32.xlu1 %v640_v7 }
 0x167   :  { %v165_v9 = vpop.xlane.xlu0 %164 }
 0x168   :  { %v166_v10 = vrot.slane %v165_v9, 4 }
 0x16a   :  { %v167_v11 = vadd.f32 %v166_v10, %v165_v9 }
 0x16c   :  { %v168_v12 = vrot.slane %v167_v11, 2 }
 0x16e   :  { %v169_v17 = vadd.f32 %v168_v12, %v167_v11 }
 0x170   :  { %v170_v21 = vrot.slane %v169_v17, 1 }
 0x172   :  { %v171_v25 = vadd.f32 %v170_v21, %v169_v17 }
 0x1d0   :  { %v153_v13 = vpop.xlane.xlu1 %152 }
 0x1d1   :  { %v154_v16 = vrot.slane %v153_v13, 4 }
 0x1d3   :  { %v155_v18 = vadd.f32 %v154_v16, %v153_v13 }
 0x1d5   :  { %v156_v20 = vrot.slane %v155_v18, 2 }
 0x1d7   :  { %v157_v22 = vadd.f32 %v156_v20, %v155_v18 }
 0x1d9   :  { %v158_v24 = vrot.slane %v157_v22, 1 }
 0x1db   :  { %v159_v26 = vadd.f32 %v158_v24, %v157_v22 }
 0x1dd   :  { %vm160_vm14 = vcmp.lt.f32.partialorder %v159_v26, 0.5 }
 0x1de   :  { %v873_v27 = vsel %vm160_vm14, %v827_v1, %v640_v7  ;;  %v875_v28 = vsel %vm160_vm14, %v171_v25, %v159_v26 }
 0x1df   :  { %v187_v29 = vsel %vm186_vm13, %v873_v27, 0.0  ;;  %v180_v31 = vmul.f32 %v875_v28, %v844_v8  ;;  %v641_v34 = vadd.f32 -1.0, %v875_v28 }
 0x1e0   :  { %188 = vadd.xlane.f32.xlu1 %v187_v29 }
 0x1e1   :  { %v181_v32 = vfloor.f32 %v180_v31 }
 0x1e3   :  { %v183_v36 = vmin.f32 %v181_v32, %v641_v34 }
 0x1e5   :  { %v184_v39 = vmax.f32 %v183_v36, 0.0 }
 0x1e7   :  { %v881_v42 = vadd.f32 1.0, %v184_v39 }
 0x269   :  { %v189_v33 = vpop.xlane.xlu1 %188 }
 0x26a   :  { %v190_v35 = vrot.slane %v189_v33, 4 }
 0x26c   :  { %v191_v37 = vadd.f32 %v190_v35, %v189_v33 }
 0x26e   :  { %v192_v38 = vrot.slane %v191_v37, 2 }
 0x270   :  { %v193_v40 = vadd.f32 %v192_v38, %v191_v37 }
 0x272   :  { %v194_v41 = vrot.slane %v193_v40, 1 }
 0x274   :  { %v195_v43 = vadd.f32 %v194_v41, %v193_v40 }
 0x276   :  { %vm196_vm15 = vcmp.ge.f32.partialorder %v195_v43, %v881_v42 }
 0x277   :  { %v197_v45 = vsel %vm196_vm15, 511.0, %v790_v44  ;;  %v198_v47 = vsel %vm196_vm15, 0.0, %v791_v46 }
 0x278   :  { %v199_v48 = vadd.f32 %v198_v47, %v197_v45 }
 0x27a   :  { %v200_v50 = vmul.f32 0.5, %v199_v48 }
 0x27c   :  { %v201_v51 = vfloor.f32 %v200_v50 }
 0x27e   :  { %v206_v52 = vrot.slane %v201_v51, %v852_v49  ;;  %v223_v62 = vadd.f32 1.0, %v201_v51 }
 0x280   :  { %208 = vperm.xlu1 %685, %v206_v52  }
 0x2fb   :  { %v209_v53 = vpop.permute.xlu1 %208 }
 0x2fc   :  { %vm211_vm1 = vcmp.le.f32.partialorder %v869_v23, %v209_v53 }
 0x2fd   :  { %v212_v54 = vsel %vm211_vm1, %v873_v27, 0.0 }
 0x2fe   :  { %213 = vadd.xlane.f32.xlu0 %v212_v54 }
 0x387   :  { %v214_v55 = vpop.xlane.xlu0 %213 }
 0x388   :  { %v215_v56 = vrot.slane %v214_v55, 4 }
 0x38a   :  { %v216_v57 = vadd.f32 %v215_v56, %v214_v55 }
 0x38c   :  { %v217_v58 = vrot.slane %v216_v57, 2 }
 0x38e   :  { %v218_v59 = vadd.f32 %v217_v58, %v216_v57 }
 0x390   :  { %v219_v60 = vrot.slane %v218_v59, 1 }
 0x392   :  { %v220_v61 = vadd.f32 %v219_v60, %v218_v59 }
 0x394   :  { %vm221_vm2 = vcmp.ge.f32.partialorder %v220_v61, %v881_v42 }
 0x395   :  { %v222_v63 = vsel %vm221_vm2, %v201_v51, %v197_v45  ;;  %v224_v3 = vsel %vm221_vm2, %v198_v47, %v223_v62 }
 0x396   :  { %v225_v4 = vadd.f32 %v224_v3, %v222_v63 }
 0x398   :  { %v226_v5 = vmul.f32 0.5, %v225_v4 }
 0x39a   :  { %v227_v7 = vfloor.f32 %v226_v5 }
 0x39c   :  { %v232_v9 = vrot.slane %v227_v7, %v852_v49  ;;  %v249_v20 = vadd.f32 1.0, %v227_v7 }
 0x39e   :  { %234 = vperm.xlu0 %686, %v232_v9  }
 0x419   :  { %v235_v10 = vpop.permute.xlu0 %234 }
 0x41a   :  { %vm237_vm3 = vcmp.le.f32.partialorder %v869_v23, %v235_v10 }
 0x41b   :  { %v238_v11 = vsel %vm237_vm3, %v873_v27, 0.0 }
 0x41c   :  { %239 = vadd.xlane.f32.xlu1 %v238_v11 }
 0x4a5   :  { %v240_v12 = vpop.xlane.xlu1 %239 }
 0x4a6   :  { %v241_v13 = vrot.slane %v240_v12, 4 }
 0x4a8   :  { %v242_v14 = vadd.f32 %v241_v13, %v240_v12 }
 0x4aa   :  { %v243_v16 = vrot.slane %v242_v14, 2 }
 0x4ac   :  { %v244_v17 = vadd.f32 %v243_v16, %v242_v14 }
 0x4ae   :  { %v245_v18 = vrot.slane %v244_v17, 1 }
 0x4b0   :  { %v246_v19 = vadd.f32 %v245_v18, %v244_v17 }
 0x4b2   :  { %vm247_vm4 = vcmp.ge.f32.partialorder %v246_v19, %v881_v42 }
 0x4b3   :  { %v248_v21 = vsel %vm247_vm4, %v227_v7, %v222_v63  ;;  %v250_v22 = vsel %vm247_vm4, %v224_v3, %v249_v20 }
 0x4b4   :  { %v251_v24 = vadd.f32 %v250_v22, %v248_v21 }
 0x4b6   :  { %v252_v25 = vmul.f32 0.5, %v251_v24 }
 0x4b8   :  { %v253_v26 = vfloor.f32 %v252_v25 }
 0x4ba   :  { %v258_v29 = vrot.slane %v253_v26, %v852_v49  ;;  %v275_v39 = vadd.f32 1.0, %v253_v26 }
 0x4bc   :  { %260 = vperm.xlu1 %685, %v258_v29  }
 0x537   :  { %v261_v30 = vpop.permute.xlu1 %260 }
 0x538   :  { %vm263_vm5 = vcmp.le.f32.partialorder %v869_v23, %v261_v30 }
 0x539   :  { %v264_v31 = vsel %vm263_vm5, %v873_v27, 0.0 }
 0x53a   :  { %265 = vadd.xlane.f32.xlu0 %v264_v31 }
 0x5c3   :  { %v266_v32 = vpop.xlane.xlu0 %265 }
 0x5c4   :  { %v267_v33 = vrot.slane %v266_v32, 4 }
 0x5c6   :  { %v268_v34 = vadd.f32 %v267_v33, %v266_v32 }
 0x5c8   :  { %v269_v35 = vrot.slane %v268_v34, 2 }
 0x5ca   :  { %v270_v36 = vadd.f32 %v269_v35, %v268_v34 }
 0x5cc   :  { %v271_v37 = vrot.slane %v270_v36, 1 }
 0x5ce   :  { %v272_v38 = vadd.f32 %v271_v37, %v270_v36 }
 0x5d0   :  { %vm273_vm6 = vcmp.ge.f32.partialorder %v272_v38, %v881_v42 }
 0x5d1   :  { %v274_v40 = vsel %vm273_vm6, %v253_v26, %v248_v21  ;;  %v276_v41 = vsel %vm273_vm6, %v250_v22, %v275_v39 }
 0x5d2   :  { %v277_v43 = vadd.f32 %v276_v41, %v274_v40 }
 0x5d4   :  { %v278_v44 = vmul.f32 0.5, %v277_v43 }
 0x5d6   :  { %v279_v45 = vfloor.f32 %v278_v44 }
 0x5d8   :  { %v284_v46 = vrot.slane %v279_v45, %v852_v49  ;;  %v301_v57 = vadd.f32 1.0, %v279_v45 }
 0x5da   :  { %286 = vperm.xlu1 %685, %v284_v46  }
 0x655   :  { %v287_v47 = vpop.permute.xlu1 %286 }
 0x656   :  { %vm289_vm7 = vcmp.le.f32.partialorder %v869_v23, %v287_v47 }
 0x657   :  { %v290_v48 = vsel %vm289_vm7, %v873_v27, 0.0 }
 0x658   :  { %291 = vadd.xlane.f32.xlu1 %v290_v48 }
 0x6e1   :  { %v292_v50 = vpop.xlane.xlu1 %291 }
 0x6e2   :  { %v293_v51 = vrot.slane %v292_v50, 4 }
 0x6e4   :  { %v294_v52 = vadd.f32 %v293_v51, %v292_v50 }
 0x6e6   :  { %v295_v53 = vrot.slane %v294_v52, 2 }
 0x6e8   :  { %v296_v54 = vadd.f32 %v295_v53, %v294_v52 }
 0x6ea   :  { %v297_v55 = vrot.slane %v296_v54, 1 }
 0x6ec   :  { %v298_v56 = vadd.f32 %v297_v55, %v296_v54 }
 0x6ee   :  { %vm299_vm8 = vcmp.ge.f32.partialorder %v298_v56, %v881_v42 }
 0x6ef   :  { %v300_v58 = vsel %vm299_vm8, %v279_v45, %v274_v40  ;;  %v302_v59 = vsel %vm299_vm8, %v276_v41, %v301_v57 }
 0x6f0   :  { %v303_v60 = vadd.f32 %v302_v59, %v300_v58 }
 0x6f2   :  { %v304_v61 = vmul.f32 0.5, %v303_v60 }
 0x6f4   :  { %v305_v62 = vfloor.f32 %v304_v61 }
 0x6f6   :  { %v310_v63 = vrot.slane %v305_v62, %v852_v49  ;;  %v327_v14 = vadd.f32 1.0, %v305_v62 }
 0x6f8   :  { %312 = vperm.xlu0 %686, %v310_v63  }
 0x773   :  { %v313_v3 = vpop.permute.xlu0 %312 }
 0x774   :  { %vm315_vm9 = vcmp.le.f32.partialorder %v869_v23, %v313_v3 }
 0x775   :  { %v316_v4 = vsel %vm315_vm9, %v873_v27, 0.0 }
 0x776   :  { %317 = vadd.xlane.f32.xlu1 %v316_v4 }
 0x7ff   :  { %v318_v5 = vpop.xlane.xlu1 %317 }
 0x800   :  { %v319_v7 = vrot.slane %v318_v5, 4 }
 0x802   :  { %v320_v9 = vadd.f32 %v319_v7, %v318_v5 }
 0x804   :  { %v321_v10 = vrot.slane %v320_v9, 2 }
 0x806   :  { %v322_v11 = vadd.f32 %v321_v10, %v320_v9 }
 0x808   :  { %v323_v12 = vrot.slane %v322_v11, 1 }
 0x80a   :  { %v324_v13 = vadd.f32 %v323_v12, %v322_v11 }
 0x80c   :  { %vm325_vm10 = vcmp.ge.f32.partialorder %v324_v13, %v881_v42 }
 0x80d   :  { %v326_v16 = vsel %vm325_vm10, %v305_v62, %v300_v58  ;;  %v328_v17 = vsel %vm325_vm10, %v302_v59, %v327_v14 }
 0x80e   :  { %v329_v18 = vadd.f32 %v328_v17, %v326_v16 }
 0x810   :  { %v330_v19 = vmul.f32 0.5, %v329_v18 }
 0x812   :  { %v331_v20 = vfloor.f32 %v330_v19 }
 0x814   :  { %v336_v21 = vrot.slane %v331_v20, %v852_v49  ;;  %v353_v34 = vadd.f32 1.0, %v331_v20 }
 0x816   :  { %338 = vperm.xlu0 %686, %v336_v21  }
 0x891   :  { %v339_v22 = vpop.permute.xlu0 %338 }
 0x892   :  { %vm341_vm11 = vcmp.le.f32.partialorder %v869_v23, %v339_v22 }
 0x893   :  { %v342_v24 = vsel %vm341_vm11, %v873_v27, 0.0 }
 0x894   :  { %343 = vadd.xlane.f32.xlu1 %v342_v24 }
 0x91d   :  { %v344_v25 = vpop.xlane.xlu1 %343 }
 0x91e   :  { %v345_v26 = vrot.slane %v344_v25, 4 }
 0x920   :  { %v346_v29 = vadd.f32 %v345_v26, %v344_v25 }
 0x922   :  { %v347_v30 = vrot.slane %v346_v29, 2 }
 0x924   :  { %v348_v31 = vadd.f32 %v347_v30, %v346_v29 }
 0x926   :  { %v349_v32 = vrot.slane %v348_v31, 1 }
 0x928   :  { %v350_v33 = vadd.f32 %v349_v32, %v348_v31 }
 0x92a   :  { %vm351_vm12 = vcmp.ge.f32.partialorder %v350_v33, %v881_v42 }
 0x92b   :  { %v352_v35 = vsel %vm351_vm12, %v331_v20, %v326_v16  ;;  %v354_v36 = vsel %vm351_vm12, %v328_v17, %v353_v34 }
 0x92c   :  { %v355_v37 = vadd.f32 %v354_v36, %v352_v35 }
 0x92e   :  { %v356_v38 = vmul.f32 0.5, %v355_v37 }
 0x930   :  { %v357_v39 = vfloor.f32 %v356_v38  ;;  %v796_v38 = vmov 1  }
 0x931   :  { %688 = vset.pattern.permute.xlu1 %v796_v38 }
 0x932   :  { %v362_v40 = vrot.slane %v357_v39, %v852_v49  ;;  %v379_v52 = vadd.f32 1.0, %v357_v39 }
 0x934   :  { %364 = vperm.xlu0 %686, %v362_v40  }
 0x9af   :  { %v365_v41 = vpop.permute.xlu0 %364 }
 0x9b0   :  { %vm367_vm13 = vcmp.le.f32.partialorder %v869_v23, %v365_v41 }
 0x9b1   :  { %v368_v43 = vsel %vm367_vm13, %v873_v27, 0.0 }
 0x9b2   :  { %369 = vadd.xlane.f32.xlu1 %v368_v43 }
 0xa3b   :  { %v370_v44 = vpop.xlane.xlu1 %369 }
 0xa3c   :  { %v371_v45 = vrot.slane %v370_v44, 4 }
 0xa3e   :  { %v372_v46 = vadd.f32 %v371_v45, %v370_v44 }
 0xa40   :  { %v373_v47 = vrot.slane %v372_v46, 2 }
 0xa42   :  { %v374_v48 = vadd.f32 %v373_v47, %v372_v46 }
 0xa44   :  { %v375_v50 = vrot.slane %v374_v48, 1 }
 0xa46   :  { %v376_v51 = vadd.f32 %v375_v50, %v374_v48 }
 0xa48   :  { %vm377_vm14 = vcmp.ge.f32.partialorder %v376_v51, %v881_v42 }
 0xa49   :  { %v378_v53 = vsel %vm377_vm14, %v357_v39, %v352_v35  ;;  %v380_v54 = vsel %vm377_vm14, %v354_v36, %v379_v52 }
 0xa4a   :  { %v381_v55 = vadd.f32 %v380_v54, %v378_v53 }
 0xa4c   :  { %v382_v56 = vmul.f32 0.5, %v381_v55 }
 0xa4e   :  { %v383_v57 = vfloor.f32 %v382_v56 }
 0xa50   :  { %v388_v58 = vrot.slane %v383_v57, %v852_v49  ;;  %v405_v9 = vadd.f32 1.0, %v383_v57 }
 0xa52   :  { %390 = vperm.xlu0 %686, %v388_v58  }
 0xacd   :  { %v391_v59 = vpop.permute.xlu0 %390 }
 0xace   :  { %vm393_vm15 = vcmp.le.f32.partialorder %v869_v23, %v391_v59 }
 0xacf   :  { %v394_v60 = vsel %vm393_vm15, %v873_v27, 0.0 }
 0xad0   :  { %395 = vadd.xlane.f32.xlu1 %v394_v60 }
 0xb59   :  { %v396_v61 = vpop.xlane.xlu1 %395 }
 0xb5a   :  { %v397_v62 = vrot.slane %v396_v61, 4 }
 0xb5c   :  { %v398_v63 = vadd.f32 %v397_v62, %v396_v61 }
 0xb5e   :  { %v399_v3 = vrot.slane %v398_v63, 2 }
 0xb60   :  { %v400_v4 = vadd.f32 %v399_v3, %v398_v63 }
 0xb62   :  { %v401_v5 = vrot.slane %v400_v4, 1 }
 0xb64   :  { %v402_v7 = vadd.f32 %v401_v5, %v400_v4 }
 0xb66   :  { %vm403_vm1 = vcmp.ge.f32.partialorder %v402_v7, %v881_v42 }
 0xb67   :  { %v404_v10 = vsel %vm403_vm1, %v383_v57, %v378_v53  ;;  %v406_v11 = vsel %vm403_vm1, %v380_v54, %v405_v9 }
 0xb68   :  { %v407_v12 = vadd.f32 %v406_v11, %v404_v10 }
 0xb6a   :  { %v408_v13 = vmul.f32 0.5, %v407_v12 }
 0xb6c   :  { %v409_v14 = vfloor.f32 %v408_v13 }
 0xb6e   :  { %v414_v16 = vrot.slane %v409_v14, %v852_v49  ;;  %v430_v30 = vadd.f32 1.0, %v409_v14 }
 0xb70   :  { %416 = vperm.xlu0 %686, %v414_v16  }
 0xb74   :  { %471 = vrot.lane.b32.xlu0 %v844_v8, %s792_s0 }
 0xbeb   :  { %v417_v17 = vpop.permute.xlu0 %416 }
 0xbec   :  { %vm419_vm2 = vcmp.le.f32.partialorder %v869_v23, %v417_v17 }
 0xbed   :  { %v420_v18 = vsel %vm419_vm2, %v873_v27, 0.0  ;;  %vm563_vm2 = vcmp.eq.s32.totalorder %v866_v15, 1 }
 0xbee   :  { %421 = vadd.xlane.f32.xlu1 %v420_v18 }
 0xbef   :  { %v472_v26 = vpop.permute.xlu0 %471 }
 0xbf0   :  { %v474_v31 = vmul.f32 %v472_v26, %v844_v8 }
 0xbff   :  { %462 = vrot.lane.b32.xlu1 %v844_v8, %s793_s1 }
 0xc77   :  { %v422_v19 = vpop.xlane.xlu1 %421 }
 0xc78   :  { %v423_v20 = vrot.slane %v422_v19, 4 }
 0xc7a   :  { %v424_v21 = vadd.f32 %v423_v20, %v422_v19 }
 0xc7b   :  { %v463_v33 = vpop.permute.xlu1 %462 }
 0xc7c   :  { %v425_v22 = vrot.slane %v424_v21, 2  ;;  %v475_v34 = vadd.f32 %v474_v31, %v463_v33  ;;  %v465_v41 = vmul.f32 %v463_v33, %v844_v8 }
 0xc7e   :  { %v426_v24 = vadd.f32 %v425_v22, %v424_v21 }
 0xc80   :  { %v427_v25 = vrot.slane %v426_v24, 1 }
 0xc82   :  { %v428_v29 = vadd.f32 %v427_v25, %v426_v24 }
 0xc84   :  { %vm429_vm3 = vcmp.ge.f32.partialorder %v428_v29, %v881_v42 }
 0xc85   :  { %v431_v32 = vsel %vm429_vm3, %v406_v11, %v430_v30 }
 0xc86   :  { %v436_v27 = vrot.slane %v431_v32, %v852_v49 }
 0xc88   :  { %438 = vperm.xlu0 %686, %v436_v27  }
 0xc8c   :  { %477 = vrot.lane.b32.xlu0 %v475_v34, %s794_s25 }
 0xc8d   :  { %687 = vset.pattern.permute.xlu0 %v796_v38 }
 0xc90   :  { %466 = vrot.lane.b32.xlu0 %v844_v8, %s795_s26 }
 0xd03   :  { %v439_v35 = vpop.permute.xlu0 %438 }
 0xd04   :  { %vm441_vm4 = vcmp.eq.f32.partialorder %v869_v23, %v439_v35 }
 0xd05   :  { %v442_v36 = vsel %vm441_vm4, 1.0, %v788_v6  ;;  %vm553_vm4 = vcmp.eq.s32.totalorder %v866_v15, 0 }
 0xd06   :  { %v452_v42 = vmul.f32 %v442_v36, %v825_v0  ;;  %v443_v37 = vmul.f32 %v442_v36, %v829_v2 }
 0xd07   :  { %v478_v39 = vpop.permute.xlu0 %477 }
 0xd08   :  { %453 = vadd.xlane.f32.xlu1 %v452_v42  ;;  %444 = vadd.xlane.f32.xlu0 %v443_v37  ;;  %691 = vrcp.f32 %v478_v39 }
 0xd0b   :  { %v467_v40 = vpop.permute.xlu0 %466 }
 0xd0c   :  { %v469_v43 = vadd.f32 %v467_v40, %v465_v41 }
 0xd0e   :  { %v645_v44 = vcvt.f32.s32 %v469_v43  ;;  %v648_v46 = vand.u32 2147483648, %v469_v43  ;;  %v643_v47 = vand.u32 2147483647, %v469_v43 }
 0xd10   :  { %v646_v45 = vcvt.s32.f32 %v645_v44  ;;  %vm644_vm5 = vcmp.lt.f32.partialorder %v643_v47, 8388608.0 }
 0xd12   :  { %v647_v23 = vand.u32 2147483647, %v646_v45 }
 0xd14   :  { %v649_v48 = vor.u32 %v648_v46, %v647_v23 }
 0xd15   :  { %v692_v50 = vpop.eup %691 }
 0xd16   :  { %v650_v51 = vsel %vm644_vm5, %v649_v48, %v469_v43  ;;  %vm574_vm5 = vcmp.eq.s32.totalorder %v866_v15, 2 }
 0xd17   :  { %v481_v52 = vmul.f32 %v692_v50, %v650_v51 }
 0xd19   :  { %693 = vrsqrt.f32 %v481_v52  ;;  %vm484_vm6 = vcmp.eq.f32.partialorder %v481_v52, inf  ;;  %v487_v56 = vand.u32 2147483648, %v481_v52  ;;  %vm486_vm7 = vcmp.eq.f32.partialorder %v481_v52, 0.0 }
 0xd26   :  { %v694_v53 = vpop.eup %693 }
 0xd27   :  { %v483_v54 = vmul.f32 %v694_v53, %v481_v52 }
 0xd29   :  { %v485_v55 = vsel %vm484_vm6, %v481_v52, %v483_v54  ;;  %vm585_vm6 = vcmp.eq.s32.totalorder %v866_v15, 3 }
 0xd2a   :  { %v488_v8 = vsel %vm486_vm7, %v487_v56, %v485_v55  ;;  %vm599_vm7 = vcmp.eq.s32.totalorder %v866_v15, 5 }
 0xd2b   :  { %v489_v57 = vmul.f32 %v488_v8, %v478_v39  ;;  %v490_v58 = vmul.f32 0.5, %v488_v8 }
 0xd2d   :  { %v492_v59 = vmul.f32 0.5, %v489_v57  ;;  %v653_v60 = vcvt.f32.s32 %v490_v58  ;;  %v656_v14 = vand.u32 2147483648, %v490_v58  ;;  %v651_v19 = vand.u32 2147483647, %v490_v58 }
 0xd2f   :  { %v661_v61 = vcvt.f32.s32 %v492_v59  ;;  %v654_v3 = vcvt.s32.f32 %v653_v60  ;;  %v664_v21 = vand.u32 2147483648, %v492_v59  ;;  %v659_v25 = vand.u32 2147483647, %v492_v59 }
 0xd30   :  { %vm652_vm8 = vcmp.lt.f32.partialorder %v651_v19, 8388608.0 }
 0xd31   :  { %v662_v7 = vcvt.s32.f32 %v661_v61  ;;  %v655_v11 = vand.u32 2147483647, %v654_v3  ;;  %vm660_vm9 = vcmp.lt.f32.partialorder %v659_v25, 8388608.0 }
 0xd33   :  { %v663_v16 = vand.u32 2147483647, %v662_v7  ;;  %v657_v20 = vor.u32 %v656_v14, %v655_v11 }
 0xd35   :  { %v665_v26 = vor.u32 %v664_v21, %v663_v16  ;;  %v658_v31 = vsel %vm652_vm8, %v657_v20, %v490_v58  ;;  %vm602_vm8 = vcmp.eq.s32.totalorder %v866_v15, 6 }
 0xd37   :  { %v666_v27 = vsel %vm660_vm9, %v665_v26, %v492_v59  ;;  %v603_v59 = vsel %vm602_vm8, %v875_v28, 0.0 }
 0xd91   :  { %v454_v62 = vpop.xlane.xlu1 %453  ;;  %v445_v63 = vpop.xlane.xlu0 %444 }
 0xd92   :  { %v455_v4 = vrot.slane %v454_v62, 4  ;;  %v446_v5 = vrot.slane %v445_v63, 4 }
 0xd94   :  { %v456_v9 = vadd.f32 %v455_v4, %v454_v62  ;;  %v447_v10 = vadd.f32 %v446_v5, %v445_v63 }
 0xd96   :  { %v457_v12 = vrot.slane %v456_v9, 2  ;;  %v448_v13 = vrot.slane %v447_v10, 2 }
 0xd98   :  { %v458_v17 = vadd.f32 %v457_v12, %v456_v9  ;;  %v449_v18 = vadd.f32 %v448_v13, %v447_v10 }
 0xd9a   :  { %v459_v22 = vrot.slane %v458_v17, 1  ;;  %v450_v24 = vrot.slane %v449_v18, 1 }
 0xd9c   :  { %v460_v29 = vadd.f32 %v459_v22, %v458_v17  ;;  %v451_v30 = vadd.f32 %v450_v24, %v449_v18 }
 0xd9e   :  { %v495_v32 = vadd.f32 %v658_v31, %v451_v30  ;;  %v494_v33 = vsub.f32 %v451_v30, %v658_v31  ;;  %v496_v36 = vsub.f32 %v460_v29, %v666_v27  ;;  %v497_v37 = vadd.f32 %v666_v27, %v460_v29 }
 0xd9f   :  { %v600_v57 = vsel %vm599_vm7, %v460_v29, 0.0 }
 0xda0   :  { %v512_v34 = vrot.slane %v495_v32, %v852_v49  ;;  %v502_v35 = vrot.slane %v494_v33, %v852_v49  ;;  %v523_v42 = vrot.slane %v496_v36, %v852_v49  ;;  %v534_v38 = vrot.slane %v497_v37, %v852_v49 }
 0xda2   :  { %514 = vperm.xlu1 %688, %v512_v34   ;;  %504 = vperm.xlu0 %687, %v502_v35  }
 0xda6   :  { %525 = vperm.xlu1 %688, %v523_v42   ;;  %555 = vperm.xlu0 %687, %v494_v33  }
 0xdaa   :  { %536 = vperm.xlu1 %688, %v534_v38   ;;  %565 = vperm.xlu0 %687, %v495_v32  }
 0xdae   :  { %576 = vperm.xlu0 %687, %v496_v36  }
 0xdb2   :  { %587 = vperm.xlu0 %687, %v497_v37  }
 0xe1d   :  { %v515_v39 = vpop.permute.xlu1 %514  ;;  %v505_v40 = vpop.permute.xlu0 %504 }
 0xe1e   :  { %vm517_vm10 = vcmp.lt.f32.partialorder %v829_v2, %v515_v39  ;;  %vm507_vm11 = vcmp.gt.f32.partialorder %v829_v2, %v505_v40 }
 0xe1f   :  { %vm518_vm13 = vmand %vm507_vm11, %vm517_vm10 }
 0xe21   :  { %v526_v41 = vpop.permute.xlu1 %525  ;;  %v556_v43 = vpop.permute.xlu0 %555 }
 0xe22   :  { %vm528_vm12 = vcmp.gt.f32.partialorder %v825_v0, %v526_v41  ;;  %v561_v46 = vrot.slane %v556_v43, %v852_v49 }
 0xe23   :  { %vm529_vm14 = vmand %vm518_vm13, %vm528_vm12 }
 0xe24   :  { %v562_v50 = vsel %vm553_vm4, %v561_v46, 0.0 }
 0xe25   :  { %v537_v44 = vpop.permute.xlu1 %536  ;;  %v566_v45 = vpop.permute.xlu0 %565 }
 0xe26   :  { %vm539_vm15 = vcmp.lt.f32.partialorder %v825_v0, %v537_v44  ;;  %v571_v23 = vrot.slane %v566_v45, %v852_v49 }
 0xe27   :  { %vm540_vm1 = vmand %vm529_vm14, %vm539_vm15 }
 0xe28   :  { %vm541_vm3 = vmand %vm540_vm1, %vm45_vm0  ;;  %v572_v48 = vsel %vm563_vm2, %v571_v23, 0.0  ;;  %vm596_vm0 = vcmp.eq.s32.totalorder %v866_v15, 4 }
 0xe29   :  { %v577_v2 = vpop.permute.xlu0 %576  ;;  %v642_v47 = vsel %vm541_vm3, 1.0, %v788_v6  ;;  %v573_v52 = vadd.f32 %v572_v48, %v562_v50  ;;  %v597_v56 = vsel %vm596_vm0, %v451_v30, 0.0 }
 0xe2a   :  { %v582_v0 = vrot.slane %v577_v2, %v852_v49  ;;  %545 = vadd.xlane.f32.xlu1 %v642_v47  ;;  %544 = vst [vmem:[#allocation7] sm:$0xff] %v642_v47 }
 0xe2c   :  { %v583_v51 = vsel %vm574_vm5, %v582_v0, 0.0 }
 0xe2d   :  { %v588_v53 = vpop.permute.xlu0 %587  ;;  %v584_v54 = vadd.f32 %v583_v51, %v573_v52 }
 0xe2e   :  { %v593_v1 = vrot.slane %v588_v53, %v852_v49 }
 0xe30   :  { %v594_v55 = vsel %vm585_vm6, %v593_v1, 0.0 }
 0xe31   :  { %v595_v6 = vadd.f32 %v594_v55, %v584_v54 }
 0xe33   :  { %v598_v8 = vadd.f32 %v597_v56, %v595_v6 }
 0xe35   :  { %v601_v58 = vadd.f32 %v600_v57, %v598_v8 }
 0xe37   :  { %v604_v60 = vadd.f32 %v603_v59, %v601_v58 }
 0xe38   :  { %746 = shalt.err (!%p743_p0)
}
 0xe39   :  { %619 = dma.vmem_to_hbm [thread:$0]  %s617_s28, 128, %s962_s2, [#allocation4]   ;;  %vm605_vm9 = vcmp.eq.s32.totalorder %v866_v15, 7  ;;  %vm608_vm10 = vcmask 57344  }
 0xe3a   :  { %s798_s5 = smov [#allocation8]  }
 0xe3b   :  { %s626_s6 = sshll.u32 %s798_s5, 4  ;;  %s627_s6 = int_to_ptr.vmem [resolvable:$true] %s626_s6 }
 0xe3c   :  { %s755_s7 = scalar_lea.vmem %s627_s6, 16  ;;  %s759_s8 = scalar_lea.vmem %s627_s6, 32 }
 0xe3d   :  { %p756_p1 = scmp.ne.s32.totalorder %s627_s6, %s755_s7  ;;  %p760_p2 = scmp.lt.s32.totalorder %s627_s6, %s627_s6 }
 0xe3e   :  { %p761_p3 = scmp.lt.s32.totalorder %s759_s8, %s755_s7 }
 0xe40   :  { %p762_p4 = por %p761_p3, %p760_p2 }
 0xe42   :  { %p763_p5 = pnand %p762_p4, %p756_p1 }
 0xeb3   :  { %v546_v49 = vpop.xlane.xlu1 %545 }
 0xeb4   :  { %v547_v61 = vrot.slane %v546_v49, 4 }
 0xeb6   :  { %v548_v62 = vadd.f32 %v547_v61, %v546_v49 }
 0xeb8   :  { %v549_v63 = vrot.slane %v548_v62, 2 }
 0xeba   :  { %v550_v28 = vadd.f32 %v549_v63, %v548_v62 }
 0xebc   :  { %v551_v3 = vrot.slane %v550_v28, 1 }
 0xebe   :  { %v552_v4 = vadd.f32 %v551_v3, %v550_v28 }
 0xec0   :  { %v606_v5 = vsel %vm605_vm9, %v552_v4, 0.0 }
 0xec1   :  { %v607_v7 = vadd.f32 %v606_v5, %v604_v60 }
 0xec3   :  { %609 = vst.msk [vmem:[#allocation8] sm:$0x1] %vm608_vm10, %v607_v7 }
 0xec4   :  { %766 = shalt.err (!%p763_p5)
}
 0xec5   :  { %629 = dma.vmem_to_hbm [thread:$0]  %s627_s6, 16, %s963_s3, [#allocation9]  }
 0xec6   :  { %779 = dma.done.wait [#allocation4], 128  }
 0xec7   :  { %780 = vsyncadd [#allocation4], 4294967168 }
 0xec8   :  { %781 = dma.done.wait [#allocation9], 16  }
 0xec9   :  { %782 = vsyncadd [#allocation9], 4294967280 }
 0xeca   :  { %636 = vsyncpa [#allocation3], 1 }
 0xecb   :  { %637 = vsyncpa [#allocation6], 1 }
 0xecc   :  { %638 = vsyncpa [#allocation4], 1 }
 0xecd   :  { %639 = vsyncpa [#allocation9], 1 }

</bundles_post_ra>
